<compile_context>
chip_gen: v5e
topology: v5e:2x2
jax: 0.10.0
libtpu: 0.0.40
codegen_flags: <defaults>
</compile_context>

<pallas_src>
import jax
import jax.numpy as jnp
from jax.experimental import pallas as pl
from jax.experimental.pallas import tpu as pltpu

LEAKY_SLOPE = 0.2
OUT_LANES = 128


def _lrelu(x):
    return jnp.where(x > 0, x, LEAKY_SLOPE * x)


def _dlrelu(x):
    return jnp.where(x > 0, jnp.float32(1.0), jnp.float32(LEAKY_SLOPE))


def _np_prior_kernel(xin_ref, w_in_ref, b_in_ref, t0_ref,
                     w_hid_ref, b_hid_ref, w_out_ref, b_out_ref,
                     res_ref, ld_ref):
    """One grid step: a (TN, K+D) block of samples; all D latent MLPs fused lane-wise."""
    TN = xin_ref.shape[0]
    n_hidden = w_hid_ref.shape[0]           # num_layers - 1 hidden->hidden layers

    x = xin_ref[...]                                                       # (TN, K+D)
    pre = jnp.dot(x, w_in_ref[...], preferred_element_type=jnp.float32) + b_in_ref[...]
    h = _lrelu(pre)                                                        # (TN, F)
    # tangent of the first pre-activation w.r.t. x_t[:, i] is exactly w1l_i (constant row)
    t = _dlrelu(pre) * t0_ref[...]                                         # (TN, F)

    for j in range(n_hidden):                # static & small -> unrolled
        w = w_hid_ref[j]                                                   # (F, F) block-diag
        ht = jnp.concatenate([h, t], axis=0)                               # (2TN, F) share one pass
        z = jnp.dot(ht, w, preferred_element_type=jnp.float32)             # (2TN, F)
        pre = z[:TN] + b_hid_ref[j]
        h = _lrelu(pre)
        t = _dlrelu(pre) * z[TN:]

    ht = jnp.concatenate([h, t], axis=0)                                   # (2TN, F)
    o = jnp.dot(ht, w_out_ref[...], preferred_element_type=jnp.float32)    # (2TN, 128)
    res_ref[...] = o[:TN] + b_out_ref[...]
    # padded lanes (>= D) of the tangent head are exactly zero -> log|0| = -inf there;
    # the wrapper only reads lanes [0:D].
    ld_ref[...] = jnp.log(jnp.abs(o[TN:]))


def init_params(key, lags, latent_size, num_layers=3, hidden_dim=64):
    """Deterministic torch.nn.Linear-style (uniform +-1/sqrt(fan_in)) init, stacked per latent."""
    K = lags * latent_size
    in_dim = K + 1
    ks = jax.random.split(key, 6)

    def unif(k, shape, fan_in):
        b = 1.0 / float(fan_in) ** 0.5
        return jax.random.uniform(k, shape, jnp.float32, -b, b)

    w1 = unif(ks[0], (latent_size, in_dim, hidden_dim), in_dim)
    b1 = unif(ks[1], (latent_size, 1, hidden_dim), in_dim)
    whid = unif(ks[2], (latent_size, num_layers - 1, hidden_dim, hidden_dim), hidden_dim)
    bhid = unif(ks[3], (latent_size, num_layers - 1, 1, hidden_dim), hidden_dim)
    w4 = unif(ks[4], (latent_size, hidden_dim, 1), hidden_dim)
    b4 = unif(ks[5], (latent_size, 1, 1), hidden_dim)
    # TODO(synk): self.compress Linear is only used when x_dim > 100; that path is not exercised here.
    return dict(w1a=w1[:, :K], w1l=w1[:, K:K + 1], b1=b1,
                whid=whid, bhid=bhid, w4=w4, b4=b4)


def _pack_params(params, mask_arr, out_lanes=OUT_LANES):
    """Fold the mask into the first layer and pack the D per-latent MLPs into
    lane-dense fused weights (block-diagonal hidden layers)."""
    w1a, w1l, b1 = params['w1a'], params['w1l'], params['b1']
    whid, bhid = params['whid'], params['bhid']
    w4, b4 = params['w4'], params['b4']
    D, K, H = w1a.shape
    NL1 = whid.shape[1]
    F = D * H
    eye = jnp.eye(D, dtype=jnp.float32)

    # First layer: [xl | xt] @ w_in, columns i*H:(i+1)*H belong to latent i.
    w1a_masked = mask_arr[:, :, None] * w1a                              # (D, K, H)
    w_in_top = jnp.transpose(w1a_masked, (1, 0, 2)).reshape(K, F)        # (K, F)
    w1l_sq = w1l[:, 0, :]                                                # (D, H)
    w_in_bot = (eye[:, :, None] * w1l_sq[None, :, :]).reshape(D, F)      # (D, F) block-diag rows
    w_in = jnp.concatenate([w_in_top, w_in_bot], axis=0)                 # (K+D, F)
    b_in = b1[:, 0, :].reshape(1, F)
    t0 = w1l_sq.reshape(1, F)                                            # initial tangent row

    # Hidden layers: block-diagonal (F, F) per layer.
    whid_t = jnp.transpose(whid, (1, 0, 2, 3))                           # (NL1, D, H, H)
    big = eye[None, :, :, None, None] * whid_t[:, :, None, :, :]         # (NL1, D, D, H, H)
    w_hid = jnp.transpose(big, (0, 1, 3, 2, 4)).reshape(NL1, F, F)
    b_hid = jnp.transpose(bhid, (1, 0, 2, 3)).reshape(NL1, 1, F)

    # Output heads: column i reads block i; padded to 128 lanes for lane-dense stores.
    w4_sq = w4[:, :, 0]                                                  # (D, H)
    w_out = (w4_sq[:, :, None] * eye[:, None, :]).reshape(F, D)          # (F, D)
    w_out = jnp.pad(w_out, ((0, 0), (0, out_lanes - D)))
    b_out = jnp.pad(b4[:, 0, 0].reshape(1, D), ((0, 0), (0, out_lanes - D)))
    return w_in, b_in, t0, w_hid, b_hid, w_out, b_out


def _round_up(n, m):
    return ((n + m - 1) // m) * m


def _unfold_windows(x, lags):
    """torch x.unfold(1, lags+1, 1).transpose(2,3) equivalent."""
    B, LL, D = x.shape
    length = LL - lags
    wins = jnp.stack([x[:, t:t + lags + 1, :] for t in range(length)], axis=1)
    return wins.reshape(B * length, lags + 1, D), length


def np_transition_prior_forward(x, params, lags, mask=None, block_n=512):
    B, LL, D = x.shape
    batch_x, length = _unfold_windows(x.astype(jnp.float32), lags)
    K = lags * D
    N = B * length

    xl = batch_x[:, :-1].reshape(N, K)           # (N, lags*x_dim)
    xt = batch_x[:, -1]                          # (N, x_dim)
    xin = jnp.concatenate([xl, xt], axis=1)      # single packed input stream (N, K+D)

    if mask is None:
        mask_arr = jnp.ones((D, K), jnp.float32)
    else:
        mask_arr = jnp.asarray(mask, jnp.float32).reshape(D, K)

    w_in, b_in, t0, w_hid, b_hid, w_out, b_out = _pack_params(params, mask_arr)
    F = w_in.shape[1]
    NL1 = w_hid.shape[0]

    TN = min(block_n, _round_up(N, 8))           # big blocks amortize per-step overhead
    Npad = _round_up(N, TN)
    xin_p = jnp.pad(xin, ((0, Npad - N), (0, 0)))

    res_p, ld_p = pl.pallas_call(
        _np_prior_kernel,
        out_shape=(jax.ShapeDtypeStruct((Npad, OUT_LANES), jnp.float32),
                   jax.ShapeDtypeStruct((Npad, OUT_LANES), jnp.float32)),
        grid=(Npad // TN,),
        in_specs=[
            pl.BlockSpec((TN, K + D), lambda n: (n, 0)),            # packed [xl | xt]
            pl.BlockSpec((K + D, F), lambda n: (0, 0)),             # fused first layer W
            pl.BlockSpec((1, F), lambda n: (0, 0)),                 # fused first layer b
            pl.BlockSpec((1, F), lambda n: (0, 0)),                 # initial tangent row
            pl.BlockSpec((NL1, F, F), lambda n: (0, 0, 0)),         # block-diag hidden W
            pl.BlockSpec((NL1, 1, F), lambda n: (0, 0, 0)),         # hidden b
            pl.BlockSpec((F, OUT_LANES), lambda n: (0, 0)),         # lane-padded output heads
            pl.BlockSpec((1, OUT_LANES), lambda n: (0, 0)),         # lane-padded output bias
        ],
        out_specs=(
            pl.BlockSpec((TN, OUT_LANES), lambda n: (n, 0)),        # residuals (lanes 0..D-1)
            pl.BlockSpec((TN, OUT_LANES), lambda n: (n, 0)),        # log|dJ|   (lanes 0..D-1)
        ),
        compiler_params=pltpu.CompilerParams(
            dimension_semantics=("parallel",),
            vmem_limit_bytes=40 * 1024 * 1024),
    )(xin_p, w_in, b_in, t0, w_hid, b_hid, w_out, b_out)

    residuals = res_p[:N, :D].reshape(B, length, D)
    log_abs_det_jacobian = ld_p[:N, :D].sum(axis=1).reshape(B, length)
    return residuals, log_abs_det_jacobian


def reference_forward(x, params, lags, mask=None):
    """Pure-JAX reference mirroring the PyTorch module (uses real jacfwd)."""
    B, LL, D = x.shape
    batch_x, length = _unfold_windows(x.astype(jnp.float32), lags)
    K = lags * D
    xl = batch_x[:, :-1].reshape(-1, K)
    xt = batch_x[:, -1]

    res_cols, ld_cols = [], []
    for i in range(D):
        w1 = jnp.concatenate([params['w1a'][i], params['w1l'][i]], axis=0)  # (K+1, H)
        b1 = params['b1'][i, 0]
        whid, bhid = params['whid'][i], params['bhid'][i]
        w4, b4 = params['w4'][i, :, 0], params['b4'][i, 0, 0]

        def mlp(inp, w1=w1, b1=b1, whid=whid, bhid=bhid, w4=w4, b4=b4):
            h = _lrelu(inp @ w1 + b1)
            for j in range(whid.shape[0]):
                h = _lrelu(h @ whid[j] + bhid[j, 0])
            return h @ w4 + b4

        m_i = jnp.ones((K,), jnp.float32) if mask is None else jnp.asarray(mask)[i]
        inp = jnp.concatenate([xl * m_i, xt[:, i:i + 1]], axis=-1)
        res_cols.append(jax.vmap(mlp)(inp)[:, None])
        jac = jax.vmap(jax.jacfwd(mlp))(inp)          # (N, K+1)
        ld_cols.append(jnp.log(jnp.abs(jac[:, -1]))[:, None])

    residuals = jnp.concatenate(res_cols, axis=1).reshape(B, length, D)
    logdet = jnp.concatenate(ld_cols, axis=1).sum(axis=1).reshape(B, length)
    return residuals, logdet


if __name__ == "__main__":
    key = jax.random.PRNGKey(0)
    lags, latent_size, num_layers, hidden_dim = 2, 8, 3, 64
    batch, length = 2, 6
    kx, kp = jax.random.split(key)

    x = jax.random.normal(kx, (batch, lags + length, latent_size), jnp.float32)
    params = init_params(kp, lags, latent_size, num_layers, hidden_dim)

    residuals, logdet = np_transition_prior_forward(x, params, lags)
    jax.block_until_ready((residuals, logdet))

    res_ref, ld_ref = reference_forward(x, params, lags)
    assert residuals.shape == (batch, length, latent_size)
    assert logdet.shape == (batch, length)
    assert jnp.allclose(residuals, res_ref, atol=1e-3, rtol=1e-3)
    assert jnp.allclose(logdet, ld_ref, atol=1e-3, rtol=1e-3)
    print("KERNEL_OK")
</pallas_src>

<mosaic_0001>
module attributes {stable_mosaic.version = 11 : i64} {
  func.func @_np_prior_kernel(%arg0: i32, %arg1: memref<16x24xf32, #tpu.memory_space<vmem>>, %arg2: memref<24x512xf32, #tpu.memory_space<vmem>>, %arg3: memref<1x512xf32, #tpu.memory_space<vmem>>, %arg4: memref<1x512xf32, #tpu.memory_space<vmem>>, %arg5: memref<2x512x512xf32, #tpu.memory_space<vmem>>, %arg6: memref<2x1x512xf32, #tpu.memory_space<vmem>>, %arg7: memref<512x128xf32, #tpu.memory_space<vmem>>, %arg8: memref<1x128xf32, #tpu.memory_space<vmem>>, %arg9: memref<16x128xf32, #tpu.memory_space<vmem>>, %arg10: memref<16x128xf32, #tpu.memory_space<vmem>>) attributes {dimension_semantics = [#tpu.dimension_semantics<parallel>], iteration_bounds = array<i64: 1>, scalar_prefetch = 0 : i64, scratch_operands = 0 : i64, tpu.core_type = #tpu.core_type<tc>, window_params = [{transform_indices = @transform_0, window_bounds = array<i64: 16, 24>}, {pipeline_mode = #tpu.pipeline_mode<synchronous>, transform_indices = @transform_1, window_bounds = array<i64: 24, 512>}, {pipeline_mode = #tpu.pipeline_mode<synchronous>, transform_indices = @transform_2, window_bounds = array<i64: 1, 512>}, {pipeline_mode = #tpu.pipeline_mode<synchronous>, transform_indices = @transform_3, window_bounds = array<i64: 1, 512>}, {pipeline_mode = #tpu.pipeline_mode<synchronous>, transform_indices = @transform_4, window_bounds = array<i64: 2, 512, 512>}, {pipeline_mode = #tpu.pipeline_mode<synchronous>, transform_indices = @transform_5, window_bounds = array<i64: 2, 1, 512>}, {pipeline_mode = #tpu.pipeline_mode<synchronous>, transform_indices = @transform_6, window_bounds = array<i64: 512, 128>}, {pipeline_mode = #tpu.pipeline_mode<synchronous>, transform_indices = @transform_7, window_bounds = array<i64: 1, 128>}, {transform_indices = @transform_8, window_bounds = array<i64: 16, 128>}, {transform_indices = @transform_9, window_bounds = array<i64: 16, 128>}]} {
    %c0 = arith.constant 0 : index
    %c0_0 = arith.constant 0 : index
    %0 = vector.load %arg1[%c0, %c0_0] : memref<16x24xf32, #tpu.memory_space<vmem>>, vector<16x24xf32>
    %c0_1 = arith.constant 0 : index
    %c0_2 = arith.constant 0 : index
    %1 = vector.load %arg2[%c0_1, %c0_2] : memref<24x512xf32, #tpu.memory_space<vmem>>, vector<24x512xf32>
    %cst = arith.constant dense<0.000000e+00> : vector<16x512xf32>
    %2 = tpu.matmul %0, %1, %cst {dimension_numbers = #tpu.dot_dimension_numbers<[1], [0], [0], [1], [0, 0, 1, 1], [], []>} : vector<16x24xf32>, vector<24x512xf32>, vector<16x512xf32> -> vector<16x512xf32>
    %c0_3 = arith.constant 0 : index
    %c0_4 = arith.constant 0 : index
    %3 = vector.load %arg3[%c0_3, %c0_4] : memref<1x512xf32, #tpu.memory_space<vmem>>, vector<1x512xf32>
    %4 = vector.broadcast %3 : vector<1x512xf32> to vector<16x512xf32>
    %5 = arith.addf %2, %4 : vector<16x512xf32>
    %cst_5 = arith.constant 0.000000e+00 : f32
    %6 = vector.broadcast %cst_5 : f32 to vector<16x512xf32>
    %7 = arith.cmpf ogt, %5, %6 : vector<16x512xf32>
    %cst_6 = arith.constant 2.000000e-01 : f32
    %8 = vector.broadcast %cst_6 : f32 to vector<16x512xf32>
    %9 = arith.mulf %8, %5 : vector<16x512xf32>
    %10 = arith.select %7, %5, %9 : vector<16x512xi1>, vector<16x512xf32>
    %cst_7 = arith.constant 0.000000e+00 : f32
    %11 = vector.broadcast %cst_7 : f32 to vector<16x512xf32>
    %12 = arith.cmpf ogt, %5, %11 : vector<16x512xf32>
    %cst_8 = arith.constant 1.000000e+00 : f32
    %cst_9 = arith.constant 2.000000e-01 : f32
    %13 = vector.broadcast %cst_8 : f32 to vector<16x512xf32>
    %14 = vector.broadcast %cst_9 : f32 to vector<16x512xf32>
    %15 = arith.select %12, %13, %14 : vector<16x512xi1>, vector<16x512xf32>
    %c0_10 = arith.constant 0 : index
    %c0_11 = arith.constant 0 : index
    %16 = vector.load %arg4[%c0_10, %c0_11] : memref<1x512xf32, #tpu.memory_space<vmem>>, vector<1x512xf32>
    %17 = vector.broadcast %16 : vector<1x512xf32> to vector<16x512xf32>
    %18 = arith.mulf %15, %17 : vector<16x512xf32>
    %c0_12 = arith.constant 0 : index
    %c0_13 = arith.constant 0 : index
    %c0_14 = arith.constant 0 : index
    %19 = vector.load %arg5[%c0_12, %c0_13, %c0_14] : memref<2x512x512xf32, #tpu.memory_space<vmem>>, vector<1x512x512xf32>
    %20 = vector.shape_cast %19 : vector<1x512x512xf32> to vector<512x512xf32>
    %21 = tpu.concatenate %10, %18 in 0 : vector<16x512xf32>, vector<16x512xf32> -> vector<32x512xf32>
    %cst_15 = arith.constant dense<0.000000e+00> : vector<32x512xf32>
    %22 = tpu.matmul %21, %20, %cst_15 {dimension_numbers = #tpu.dot_dimension_numbers<[1], [0], [0], [1], [0, 0, 1, 1], [], []>} : vector<32x512xf32>, vector<512x512xf32>, vector<32x512xf32> -> vector<32x512xf32>
    %23 = vector.extract_strided_slice %22 {offsets = [0, 0], sizes = [16, 512], strides = [1, 1]} : vector<32x512xf32> to vector<16x512xf32>
    %c0_16 = arith.constant 0 : index
    %c0_17 = arith.constant 0 : index
    %c0_18 = arith.constant 0 : index
    %24 = vector.load %arg6[%c0_16, %c0_17, %c0_18] : memref<2x1x512xf32, #tpu.memory_space<vmem>>, vector<1x1x512xf32>
    %25 = vector.shape_cast %24 : vector<1x1x512xf32> to vector<1x512xf32>
    %26 = vector.broadcast %25 : vector<1x512xf32> to vector<16x512xf32>
    %27 = arith.addf %23, %26 : vector<16x512xf32>
    %cst_19 = arith.constant 0.000000e+00 : f32
    %28 = vector.broadcast %cst_19 : f32 to vector<16x512xf32>
    %29 = arith.cmpf ogt, %27, %28 : vector<16x512xf32>
    %cst_20 = arith.constant 2.000000e-01 : f32
    %30 = vector.broadcast %cst_20 : f32 to vector<16x512xf32>
    %31 = arith.mulf %30, %27 : vector<16x512xf32>
    %32 = arith.select %29, %27, %31 : vector<16x512xi1>, vector<16x512xf32>
    %cst_21 = arith.constant 0.000000e+00 : f32
    %33 = vector.broadcast %cst_21 : f32 to vector<16x512xf32>
    %34 = arith.cmpf ogt, %27, %33 : vector<16x512xf32>
    %cst_22 = arith.constant 1.000000e+00 : f32
    %cst_23 = arith.constant 2.000000e-01 : f32
    %35 = vector.broadcast %cst_22 : f32 to vector<16x512xf32>
    %36 = vector.broadcast %cst_23 : f32 to vector<16x512xf32>
    %37 = arith.select %34, %35, %36 : vector<16x512xi1>, vector<16x512xf32>
    %38 = vector.extract_strided_slice %22 {offsets = [16, 0], sizes = [16, 512], strides = [1, 1]} : vector<32x512xf32> to vector<16x512xf32>
    %39 = arith.mulf %37, %38 : vector<16x512xf32>
    %c1 = arith.constant 1 : index
    %c0_24 = arith.constant 0 : index
    %c0_25 = arith.constant 0 : index
    %40 = vector.load %arg5[%c1, %c0_24, %c0_25] : memref<2x512x512xf32, #tpu.memory_space<vmem>>, vector<1x512x512xf32>
    %41 = vector.shape_cast %40 : vector<1x512x512xf32> to vector<512x512xf32>
    %42 = tpu.concatenate %32, %39 in 0 : vector<16x512xf32>, vector<16x512xf32> -> vector<32x512xf32>
    %cst_26 = arith.constant dense<0.000000e+00> : vector<32x512xf32>
    %43 = tpu.matmul %42, %41, %cst_26 {dimension_numbers = #tpu.dot_dimension_numbers<[1], [0], [0], [1], [0, 0, 1, 1], [], []>} : vector<32x512xf32>, vector<512x512xf32>, vector<32x512xf32> -> vector<32x512xf32>
    %44 = vector.extract_strided_slice %43 {offsets = [0, 0], sizes = [16, 512], strides = [1, 1]} : vector<32x512xf32> to vector<16x512xf32>
    %c1_27 = arith.constant 1 : index
    %c0_28 = arith.constant 0 : index
    %c0_29 = arith.constant 0 : index
    %45 = vector.load %arg6[%c1_27, %c0_28, %c0_29] : memref<2x1x512xf32, #tpu.memory_space<vmem>>, vector<1x1x512xf32>
    %46 = vector.shape_cast %45 : vector<1x1x512xf32> to vector<1x512xf32>
    %47 = vector.broadcast %46 : vector<1x512xf32> to vector<16x512xf32>
    %48 = arith.addf %44, %47 : vector<16x512xf32>
    %cst_30 = arith.constant 0.000000e+00 : f32
    %49 = vector.broadcast %cst_30 : f32 to vector<16x512xf32>
    %50 = arith.cmpf ogt, %48, %49 : vector<16x512xf32>
    %cst_31 = arith.constant 2.000000e-01 : f32
    %51 = vector.broadcast %cst_31 : f32 to vector<16x512xf32>
    %52 = arith.mulf %51, %48 : vector<16x512xf32>
    %53 = arith.select %50, %48, %52 : vector<16x512xi1>, vector<16x512xf32>
    %cst_32 = arith.constant 0.000000e+00 : f32
    %54 = vector.broadcast %cst_32 : f32 to vector<16x512xf32>
    %55 = arith.cmpf ogt, %48, %54 : vector<16x512xf32>
    %cst_33 = arith.constant 1.000000e+00 : f32
    %cst_34 = arith.constant 2.000000e-01 : f32
    %56 = vector.broadcast %cst_33 : f32 to vector<16x512xf32>
    %57 = vector.broadcast %cst_34 : f32 to vector<16x512xf32>
    %58 = arith.select %55, %56, %57 : vector<16x512xi1>, vector<16x512xf32>
    %59 = vector.extract_strided_slice %43 {offsets = [16, 0], sizes = [16, 512], strides = [1, 1]} : vector<32x512xf32> to vector<16x512xf32>
    %60 = arith.mulf %58, %59 : vector<16x512xf32>
    %61 = tpu.concatenate %53, %60 in 0 : vector<16x512xf32>, vector<16x512xf32> -> vector<32x512xf32>
    %c0_35 = arith.constant 0 : index
    %c0_36 = arith.constant 0 : index
    %62 = vector.load %arg7[%c0_35, %c0_36] : memref<512x128xf32, #tpu.memory_space<vmem>>, vector<512x128xf32>
    %cst_37 = arith.constant dense<0.000000e+00> : vector<32x128xf32>
    %63 = tpu.matmul %61, %62, %cst_37 {dimension_numbers = #tpu.dot_dimension_numbers<[1], [0], [0], [1], [0, 0, 1, 1], [], []>} : vector<32x512xf32>, vector<512x128xf32>, vector<32x128xf32> -> vector<32x128xf32>
    %64 = vector.extract_strided_slice %63 {offsets = [0, 0], sizes = [16, 128], strides = [1, 1]} : vector<32x128xf32> to vector<16x128xf32>
    %c0_38 = arith.constant 0 : index
    %c0_39 = arith.constant 0 : index
    %65 = vector.load %arg8[%c0_38, %c0_39] : memref<1x128xf32, #tpu.memory_space<vmem>>, vector<1x128xf32>
    %66 = vector.broadcast %65 : vector<1x128xf32> to vector<16x128xf32>
    %67 = arith.addf %64, %66 : vector<16x128xf32>
    %c0_40 = arith.constant 0 : index
    %c0_41 = arith.constant 0 : index
    %68 = vector.load %arg9[%c0_40, %c0_41] : memref<16x128xf32, #tpu.memory_space<vmem>>, vector<16x128xf32>
    tpu.vector_store %arg9[%c0_40, %c0_41], %67 {strides = array<i32>} : memref<16x128xf32, #tpu.memory_space<vmem>>, vector<16x128xf32>,
    %69 = vector.extract_strided_slice %63 {offsets = [16, 0], sizes = [16, 128], strides = [1, 1]} : vector<32x128xf32> to vector<16x128xf32>
    %70 = math.absf %69 : vector<16x128xf32>
    %71 = math.log %70 : vector<16x128xf32>
    %c0_42 = arith.constant 0 : index
    %c0_43 = arith.constant 0 : index
    %72 = vector.load %arg10[%c0_42, %c0_43] : memref<16x128xf32, #tpu.memory_space<vmem>>, vector<16x128xf32>
    tpu.vector_store %arg10[%c0_42, %c0_43], %71 {strides = array<i32>} : memref<16x128xf32, #tpu.memory_space<vmem>>, vector<16x128xf32>,
    return
  }
  func.func @transform_0(%arg0: i32) -> (i32, i32) {
    %c0_i32 = arith.constant 0 : i32
    %c0_i32_0 = arith.constant 0 : i32
    return %arg0, %c0_i32 : i32, i32
  }
  func.func @transform_1(%arg0: i32) -> (i32, i32) {
    %c0_i32 = arith.constant 0 : i32
    %c0_i32_0 = arith.constant 0 : i32
    %c0_i32_1 = arith.constant 0 : i32
    return %c0_i32, %c0_i32_0 : i32, i32
  }
  func.func @transform_2(%arg0: i32) -> (i32, i32) {
    %c0_i32 = arith.constant 0 : i32
    %c0_i32_0 = arith.constant 0 : i32
    %c0_i32_1 = arith.constant 0 : i32
    return %c0_i32, %c0_i32_0 : i32, i32
  }
  func.func @transform_3(%arg0: i32) -> (i32, i32) {
    %c0_i32 = arith.constant 0 : i32
    %c0_i32_0 = arith.constant 0 : i32
    %c0_i32_1 = arith.constant 0 : i32
    return %c0_i32, %c0_i32_0 : i32, i32
  }
  func.func @transform_4(%arg0: i32) -> (i32, i32, i32) {
    %c0_i32 = arith.constant 0 : i32
    %c0_i32_0 = arith.constant 0 : i32
    %c0_i32_1 = arith.constant 0 : i32
    %c0_i32_2 = arith.constant 0 : i32
    return %c0_i32, %c0_i32_0, %c0_i32_1 : i32, i32, i32
  }
  func.func @transform_5(%arg0: i32) -> (i32, i32, i32) {
    %c0_i32 = arith.constant 0 : i32
    %c0_i32_0 = arith.constant 0 : i32
    %c0_i32_1 = arith.constant 0 : i32
    %c0_i32_2 = arith.constant 0 : i32
    return %c0_i32, %c0_i32_0, %c0_i32_1 : i32, i32, i32
  }
  func.func @transform_6(%arg0: i32) -> (i32, i32) {
    %c0_i32 = arith.constant 0 : i32
    %c0_i32_0 = arith.constant 0 : i32
    %c0_i32_1 = arith.constant 0 : i32
    return %c0_i32, %c0_i32_0 : i32, i32
  }
  func.func @transform_7(%arg0: i32) -> (i32, i32) {
    %c0_i32 = arith.constant 0 : i32
    %c0_i32_0 = arith.constant 0 : i32
    %c0_i32_1 = arith.constant 0 : i32
    return %c0_i32, %c0_i32_0 : i32, i32
  }
  func.func @transform_8(%arg0: i32) -> (i32, i32) {
    %c0_i32 = arith.constant 0 : i32
    %c0_i32_0 = arith.constant 0 : i32
    return %arg0, %c0_i32 : i32, i32
  }
  func.func @transform_9(%arg0: i32) -> (i32, i32) {
    %c0_i32 = arith.constant 0 : i32
    %c0_i32_0 = arith.constant 0 : i32
    return %arg0, %c0_i32 : i32, i32
  }
}

</mosaic_0001>

<bundles_post_ra>
// kernel: tpu_custom_call.1
= control target key start
LH: loop header
LB: loop body
LE: loop exit
PB: predicated region body
PF: predicated region fallthrough
CT: control target
= control target key end

     0   :  { %15 = vsyncpa [#allocation3], 0  ;;  %s2943_s0 = inlined_call_operand.hbm [shape: f32[16,24], index: 0, kind: input, shape index: {}]   ;;  %s2944_s1 = inlined_call_operand.hbm [shape: f32[24,512], index: 1, kind: input, shape index: {}]   ;;  %s2945_s2 = inlined_call_operand.hbm [shape: f32[1,512], index: 2, kind: input, shape index: {}]   ;;  %s2946_s3 = inlined_call_operand.hbm [shape: f32[1,512], index: 3, kind: input, shape index: {}]   ;;  %s2947_s4 = inlined_call_operand.hbm [shape: f32[2,512,512], index: 4, kind: input, shape index: {}]   ;;  %s2948_s5 = inlined_call_operand.hbm [shape: f32[2,1,512], index: 5, kind: input, shape index: {}]   ;;  %s2949_s6 = inlined_call_operand.hbm [shape: f32[512,128], index: 6, kind: input, shape index: {}]   ;;  %s2950_s7 = inlined_call_operand.hbm [shape: f32[1,128], index: 7, kind: input, shape index: {}]   ;;  %s2951_s8 = inlined_call_operand.hbm [shape: f32[16,128], index: 8, kind: output, shape index: {0}]   ;;  %s2952_s9 = inlined_call_operand.hbm [shape: f32[16,128], index: 9, kind: output, shape index: {1}]  }
   0x1   :  { %16 = vsyncpa [#allocation6], 0 }
   0x2   :  { %17 = vsyncpa [#allocation9], 0 }
   0x3   :  { %18 = vsyncpa [#allocation12], 0 }
   0x4   :  { %19 = vsyncpa [#allocation15], 0 }
   0x5   :  { %20 = vsyncpa [#allocation4], 0  ;;  %s39_s11 = sshll.u32 %s2944_s1, 4  ;;  %s40_s11 = int_to_ptr.hbm [resolvable:$true] %s39_s11 }
   0x6   :  { %21 = vsyncpa [#allocation18], 0  ;;  %s2404_s12 = smov [#allocation5]   ;;  %s64_s16 = sshll.u32 %s2946_s3, 4  ;;  %s65_s16 = int_to_ptr.hbm [resolvable:$true] %s64_s16 }
   0x7   :  { %s41_s13 = sshll.u32 %s2404_s12, 4  ;;  %s2405_s17 = smov 512   ;;  %s42_s13 = int_to_ptr.vmem [resolvable:$true] %s41_s13 }
   0x8   :  { %s2406_s18 = smov 32   ;;  %s2407_s19 = smov [#allocation8]  }
   0x9   :  { %47 = dma.hbm_to_vmem [thread:$0]  %s40_s11, 1536, %s42_s13, [#allocation6], %s2405_s17, %s2405_s17, %s2406_s18  }
   0xa   :  { %s66_s20 = sshll.u32 %s2407_s19, 4  ;;  %s87_s22 = sshll.u32 %s2948_s5, 4  ;;  %s67_s20 = int_to_ptr.vmem [resolvable:$true] %s66_s20  ;;  %s88_s22 = int_to_ptr.hbm [resolvable:$true] %s87_s22 }
   0xb   :  { %69 = dma.hbm_to_vmem [thread:$0]  %s65_s16, 64, %s67_s20, [#allocation9]  }
   0xc   :  { %s2408_s23 = smov [#allocation11]   ;;  %s26_s26 = sshll.u32 %s2943_s0, 4  ;;  %s27_s26 = int_to_ptr.hbm [resolvable:$true] %s26_s26 }
   0xd   :  { %s89_s24 = sshll.u32 %s2408_s23, 4  ;;  %s2409_s27 = smov 64   ;;  %s90_s24 = int_to_ptr.vmem [resolvable:$true] %s89_s24 }
   0xe   :  { %s2410_s28 = smov 4   ;;  %s2411_s29 = smov [#allocation2]  }
   0xf   :  { %95 = dma.hbm_to_vmem [thread:$0]  %s88_s22, 128, %s90_s24, [#allocation12], %s2409_s27, %s2409_s27, %s2410_s28  }
  0x10   :  { %s28_s30 = sshll.u32 %s2411_s29, 4  ;;  %s2412_s10 = smov 128   ;;  %s29_s30 = int_to_ptr.vmem [resolvable:$true] %s28_s30 }
  0x11   :  { %s2413_s11 = smov 8   ;;  %s53_s13 = sshll.u32 %s2945_s2, 4  ;;  %s54_s13 = int_to_ptr.hbm [resolvable:$true] %s53_s13 }
  0x12   :  { %34 = dma.hbm_to_vmem [thread:$0]  %s27_s26, 256, %s29_s30, [#allocation3], %s2412_s10, %s2412_s10, %s2413_s11  }
  0x13   :  { %s2414_s14 = smov [#allocation7]   ;;  %s74_s19 = sshll.u32 %s2947_s4, 4  ;;  %s75_s19 = int_to_ptr.hbm [resolvable:$true] %s74_s19 }
  0x14   :  { %s55_s0 = sshll.u32 %s2414_s14, 4  ;;  %s2415_s20 = smov [#allocation10]   ;;  %s56_s0 = int_to_ptr.vmem [resolvable:$true] %s55_s0 }
  0x15   :  { %58 = dma.hbm_to_vmem [thread:$0]  %s54_s13, 64, %s56_s0, [#allocation6]  }
  0x16   :  { %s76_s21 = sshll.u32 %s2415_s20, 4  ;;  %s100_s23 = sshll.u32 %s2949_s6, 4  ;;  %s77_s21 = int_to_ptr.vmem [resolvable:$true] %s76_s21  ;;  %s101_s23 = int_to_ptr.hbm [resolvable:$true] %s100_s23 }
  0x17   :  { %82 = dma.hbm_to_vmem [thread:$0]  %s75_s19, 65536, %s77_s21, [#allocation9], %s2405_s17, %s2405_s17, %s2406_s18  }
  0x18   :  { %s114_s3 = sshll.u32 %s2950_s7, 4  ;;  %s2416_s25 = smov [#allocation13]   ;;  %s115_s3 = int_to_ptr.hbm [resolvable:$true] %s114_s3 }
  0x19   :  { %s102_s4 = sshll.u32 %s2416_s25, 4  ;;  %s2417_s26 = smov [#allocation14]   ;;  %s103_s4 = int_to_ptr.vmem [resolvable:$true] %s102_s4 }
  0x1a   :  { %108 = dma.hbm_to_vmem [thread:$0]  %s101_s23, 8192, %s103_s4, [#allocation12], %s2412_s10, %s2412_s10, %s2413_s11  }
  0x1b   :  { %s116_s6 = sshll.u32 %s2417_s26, 4  ;;  %s117_s6 = int_to_ptr.vmem [resolvable:$true] %s116_s6 }
  0x1c   :  { %119 = dma.hbm_to_vmem [thread:$0]  %s115_s3, 16, %s117_s6, [#allocation15]  }
  0x1d   :  { %2390 = dma.done.wait [#allocation3], 256  }
  0x1e   :  { %2391 = vsyncadd [#allocation3], 4294967040 }
  0x1f   :  { %2392 = dma.done.wait [#allocation6], 1600  }
  0x20   :  { %2393 = vsyncadd [#allocation6], 4294965696 }
  0x21   :  { %2394 = dma.done.wait [#allocation9], 65600  }
  0x22   :  { %2395 = vsyncadd [#allocation9], 4294901696 }
  0x23   :  { %2396 = dma.done.wait [#allocation12], 8320  }
  0x24   :  { %2397 = vsyncadd [#allocation12], 4294958976 }
  0x25   :  { %2398 = dma.done.wait [#allocation15], 16  }
  0x26   :  { %2399 = vsyncadd [#allocation15], 4294967280  ;;  %v162_v0 = vld [vmem:[#allocation5 + $0x40] sm:$0xff]  ;;  %v163_v1 = vld [vmem:[#allocation5 + $0x48] sm:$0xff]  ;;  %vm176_vm0 = vcmask 195584   ;;  %s2419_s7 = smov [#allocation16]  }
  0x27   :  { %v164_v2 = vld [vmem:[#allocation5 + $0x50] sm:$0xff]  ;;  %196 = vmatpush.msra.mxu0 %v162_v0  ;;  %219 = vmatpush.msra.mxu1 %v163_v1  ;;  %v165_v3 = vld [vmem:[#allocation5 + $0x58] sm:$0xff]  ;;  %v158_v4 = vld [vmem:[#allocation5 + $0x20] sm:$0xff]  ;;  %s2083_s17 = sshll.u32 %s2419_s7, 4  ;;  %s2085_s28 = sshll.u32 %s2951_s8, 4  ;;  %s2084_s17 = int_to_ptr.vmem [resolvable:$true] %s2083_s17  ;;  %s2086_s28 = int_to_ptr.hbm [resolvable:$true] %s2085_s28 }
  0x28   :  { %v159_v5 = vld [vmem:[#allocation5 + $0x28] sm:$0xff]  ;;  %242 = vmatpush.msra.mxu2 %v164_v2  ;;  %265 = vmatpush.msra.mxu3 %v165_v3  ;;  %v160_v6 = vld [vmem:[#allocation5 + $0x30] sm:$0xff]  ;;  %v161_v7 = vld [vmem:[#allocation5 + $0x38] sm:$0xff]  ;;  %s2420_s8 = smov [#allocation17]   ;;  %s2098_s12 = sshll.u32 %s2952_s9, 4  ;;  %s2099_s12 = int_to_ptr.hbm [resolvable:$true] %s2098_s12 }
  0x29   :  { %v154_v8 = vld [vmem:[#allocation5] sm:$0xff]  ;;  %197 = vmatpush.msra.mxu0 %v158_v4  ;;  %220 = vmatpush.msra.mxu1 %v159_v5  ;;  %v155_v9 = vld [vmem:[#allocation5 + $0x8] sm:$0xff]  ;;  %v156_v10 = vld [vmem:[#allocation5 + $0x10] sm:$0xff]  ;;  %s2096_s29 = sshll.u32 %s2420_s8, 4  ;;  %s2097_s29 = int_to_ptr.vmem [resolvable:$true] %s2096_s29 }
  0x2a   :  { %v157_v11 = vld [vmem:[#allocation5 + $0x18] sm:$0xff]  ;;  %243 = vmatpush.msra.mxu2 %v160_v6  ;;  %266 = vmatpush.msra.mxu3 %v161_v7  ;;  %v152_v12 = vld [vmem:[#allocation2] sm:$0xff]  ;;  %v385_v13 = vld [vmem:[#allocation10 + $0x1e0] sm:$0xff] }
  0x2b   :  { %198 = vmatpush.msra.mxu0 %v154_v8  ;;  %221 = vmatpush.msra.mxu1 %v155_v9  ;;  %v449_v14 = vld [vmem:[#allocation10 + $0x3e0] sm:$0xff]  ;;  %v153_v25 = vld [vmem:[#allocation2 + $0x8] sm:$0xff] }
  0x2c   :  { %244 = vmatpush.msra.mxu2 %v156_v10  ;;  %267 = vmatpush.msra.mxu3 %v157_v11  ;;  %v513_v15 = vld [vmem:[#allocation10 + $0x5e0] sm:$0xff]  ;;  %v386_v10 = vld [vmem:[#allocation10 + $0x1e8] sm:$0xff] }
  0x2d   :  { %2120 = vmatmul.msk.f32.vlgmr.msra.gmra.mxu0 %vm176_vm0, %v152_v12  ;;  %2122 = vmatmul.msk.f32.vlgmr.msra.gmra.mxu1 %vm176_vm0, %v152_v12  ;;  %v577_v16 = vld [vmem:[#allocation10 + $0x7e0] sm:$0xff]  ;;  %v450_v11 = vld [vmem:[#allocation10 + $0x3e8] sm:$0xff] }
  0x2e   :  { %2124 = vmatmul.msk.f32.vlgmr.msra.gmra.mxu2 %vm176_vm0, %v152_v12  ;;  %2126 = vmatmul.msk.f32.vlgmr.msra.gmra.mxu3 %vm176_vm0, %v152_v12  ;;  %v381_v17 = vld [vmem:[#allocation10 + $0x1c0] sm:$0xff] }
  0x2f   :  { %v445_v18 = vld [vmem:[#allocation10 + $0x3c0] sm:$0xff]  ;;  %581 = vmatpush.msrb.mxu0 %v385_v13  ;;  %610 = vmatpush.msrb.mxu1 %v449_v14  ;;  %v382_v14 = vld [vmem:[#allocation10 + $0x1c8] sm:$0xff] }
  0x30   :  { %v509_v19 = vld [vmem:[#allocation10 + $0x5c0] sm:$0xff]  ;;  %639 = vmatpush.msrb.mxu2 %v513_v15  ;;  %668 = vmatpush.msrb.mxu3 %v577_v16  ;;  %v446_v15 = vld [vmem:[#allocation10 + $0x3c8] sm:$0xff] }
  0x31   :  { %v573_v20 = vld [vmem:[#allocation10 + $0x7c0] sm:$0xff]  ;;  %582 = vmatpush.msrb.mxu0 %v381_v17  ;;  %611 = vmatpush.msrb.mxu1 %v445_v18  ;;  %v378_v18 = vld [vmem:[#allocation10 + $0x1a8] sm:$0xff] }
  0x32   :  { %v377_v21 = vld [vmem:[#allocation10 + $0x1a0] sm:$0xff]  ;;  %640 = vmatpush.msrb.mxu2 %v509_v19  ;;  %669 = vmatpush.msrb.mxu3 %v573_v20  ;;  %v442_v19 = vld [vmem:[#allocation10 + $0x3a8] sm:$0xff] }
  0x33   :  { %v441_v22 = vld [vmem:[#allocation10 + $0x3a0] sm:$0xff]  ;;  %583 = vmatpush.msrb.mxu0 %v377_v21  ;;  %v514_v20 = vld [vmem:[#allocation10 + $0x5e8] sm:$0xff] }
  0x34   :  { %v505_v23 = vld [vmem:[#allocation10 + $0x5a0] sm:$0xff]  ;;  %612 = vmatpush.msrb.mxu1 %v441_v22  ;;  %v374_v21 = vld [vmem:[#allocation10 + $0x188] sm:$0xff] }
  0x35   :  { %v569_v24 = vld [vmem:[#allocation10 + $0x7a0] sm:$0xff]  ;;  %641 = vmatpush.msrb.mxu2 %v505_v23  ;;  %2121 = vmatmul.msk.f32.gmra.mxu0 %vm176_vm0, %v153_v25  ;;  %v438_v22 = vld [vmem:[#allocation10 + $0x388] sm:$0xff] }
  0x36   :  { %v373_v26 = vld [vmem:[#allocation10 + $0x180] sm:$0xff]  ;;  %670 = vmatpush.msrb.mxu3 %v569_v24  ;;  %2123 = vmatmul.msk.f32.gmra.mxu1 %vm176_vm0, %v153_v25  ;;  %v578_v23 = vld [vmem:[#allocation10 + $0x7e8] sm:$0xff] }
  0x37   :  { %v437_v27 = vld [vmem:[#allocation10 + $0x380] sm:$0xff]  ;;  %2125 = vmatmul.msk.f32.gmra.mxu2 %vm176_vm0, %v153_v25  ;;  %2127 = vmatmul.msk.f32.gmra.mxu3 %vm176_vm0, %v153_v25  ;;  %v510_v24 = vld [vmem:[#allocation10 + $0x5c8] sm:$0xff] }
  0x38   :  { %v501_v28 = vld [vmem:[#allocation10 + $0x580] sm:$0xff]  ;;  %584 = vmatpush.msrb.mxu0 %v373_v26  ;;  %613 = vmatpush.msrb.mxu1 %v437_v27  ;;  %v370_v25 = vld [vmem:[#allocation10 + $0x168] sm:$0xff] }
  0x39   :  { %v565_v29 = vld [vmem:[#allocation10 + $0x780] sm:$0xff]  ;;  %642 = vmatpush.msrb.mxu2 %v501_v28  ;;  %v434_v26 = vld [vmem:[#allocation10 + $0x368] sm:$0xff] }
  0x3a   :  { %v369_v30 = vld [vmem:[#allocation10 + $0x160] sm:$0xff]  ;;  %671 = vmatpush.msrb.mxu3 %v565_v29  ;;  %v574_v27 = vld [vmem:[#allocation10 + $0x7c8] sm:$0xff] }
  0x3b   :  { %v433_v31 = vld [vmem:[#allocation10 + $0x360] sm:$0xff]  ;;  %585 = vmatpush.msrb.mxu0 %v369_v30  ;;  %v506_v28 = vld [vmem:[#allocation10 + $0x5a8] sm:$0xff] }
  0x3c   :  { %v497_v32 = vld [vmem:[#allocation10 + $0x560] sm:$0xff]  ;;  %614 = vmatpush.msrb.mxu1 %v433_v31  ;;  %v366_v29 = vld [vmem:[#allocation10 + $0x148] sm:$0xff] }
  0x3d   :  { %v561_v33 = vld [vmem:[#allocation10 + $0x760] sm:$0xff]  ;;  %643 = vmatpush.msrb.mxu2 %v497_v32  ;;  %v430_v30 = vld [vmem:[#allocation10 + $0x348] sm:$0xff] }
  0x3e   :  { %v365_v34 = vld [vmem:[#allocation10 + $0x140] sm:$0xff]  ;;  %672 = vmatpush.msrb.mxu3 %v561_v33  ;;  %v570_v31 = vld [vmem:[#allocation10 + $0x7a8] sm:$0xff] }
  0x3f   :  { %v429_v35 = vld [vmem:[#allocation10 + $0x340] sm:$0xff]  ;;  %586 = vmatpush.msrb.mxu0 %v365_v34  ;;  %v502_v32 = vld [vmem:[#allocation10 + $0x588] sm:$0xff] }
  0x40   :  { %v493_v36 = vld [vmem:[#allocation10 + $0x540] sm:$0xff]  ;;  %615 = vmatpush.msrb.mxu1 %v429_v35  ;;  %v362_v33 = vld [vmem:[#allocation10 + $0x128] sm:$0xff] }
  0x41   :  { %v557_v37 = vld [vmem:[#allocation10 + $0x740] sm:$0xff]  ;;  %644 = vmatpush.msrb.mxu2 %v493_v36  ;;  %v426_v34 = vld [vmem:[#allocation10 + $0x328] sm:$0xff] }
  0x42   :  { %v361_v38 = vld [vmem:[#allocation10 + $0x120] sm:$0xff]  ;;  %673 = vmatpush.msrb.mxu3 %v557_v37  ;;  %v566_v35 = vld [vmem:[#allocation10 + $0x788] sm:$0xff] }
  0x43   :  { %v425_v39 = vld [vmem:[#allocation10 + $0x320] sm:$0xff]  ;;  %587 = vmatpush.msrb.mxu0 %v361_v38  ;;  %v498_v36 = vld [vmem:[#allocation10 + $0x568] sm:$0xff] }
  0x44   :  { %v489_v40 = vld [vmem:[#allocation10 + $0x520] sm:$0xff]  ;;  %616 = vmatpush.msrb.mxu1 %v425_v39  ;;  %v358_v37 = vld [vmem:[#allocation10 + $0x108] sm:$0xff] }
  0x45   :  { %v553_v41 = vld [vmem:[#allocation10 + $0x720] sm:$0xff]  ;;  %645 = vmatpush.msrb.mxu2 %v489_v40  ;;  %v422_v38 = vld [vmem:[#allocation10 + $0x308] sm:$0xff] }
  0x46   :  { %v357_v42 = vld [vmem:[#allocation10 + $0x100] sm:$0xff]  ;;  %674 = vmatpush.msrb.mxu3 %v553_v41  ;;  %v562_v39 = vld [vmem:[#allocation10 + $0x768] sm:$0xff] }
  0x47   :  { %v421_v43 = vld [vmem:[#allocation10 + $0x300] sm:$0xff]  ;;  %588 = vmatpush.msrb.mxu0 %v357_v42  ;;  %v494_v40 = vld [vmem:[#allocation10 + $0x548] sm:$0xff] }
  0x48   :  { %v485_v44 = vld [vmem:[#allocation10 + $0x500] sm:$0xff]  ;;  %617 = vmatpush.msrb.mxu1 %v421_v43  ;;  %v354_v41 = vld [vmem:[#allocation10 + $0xe8] sm:$0xff] }
  0x49   :  { %v549_v45 = vld [vmem:[#allocation10 + $0x700] sm:$0xff]  ;;  %646 = vmatpush.msrb.mxu2 %v485_v44  ;;  %v418_v42 = vld [vmem:[#allocation10 + $0x2e8] sm:$0xff] }
  0x4a   :  { %v353_v46 = vld [vmem:[#allocation10 + $0xe0] sm:$0xff]  ;;  %675 = vmatpush.msrb.mxu3 %v549_v45  ;;  %v558_v43 = vld [vmem:[#allocation10 + $0x748] sm:$0xff] }
  0x4b   :  { %v417_v47 = vld [vmem:[#allocation10 + $0x2e0] sm:$0xff]  ;;  %589 = vmatpush.msrb.mxu0 %v353_v46  ;;  %v490_v44 = vld [vmem:[#allocation10 + $0x528] sm:$0xff] }
  0x4c   :  { %v481_v48 = vld [vmem:[#allocation10 + $0x4e0] sm:$0xff]  ;;  %618 = vmatpush.msrb.mxu1 %v417_v47  ;;  %v350_v45 = vld [vmem:[#allocation10 + $0xc8] sm:$0xff] }
  0x4d   :  { %v545_v49 = vld [vmem:[#allocation10 + $0x6e0] sm:$0xff]  ;;  %647 = vmatpush.msrb.mxu2 %v481_v48  ;;  %v554_v46 = vld [vmem:[#allocation10 + $0x728] sm:$0xff] }
  0x4e   :  { %v349_v50 = vld [vmem:[#allocation10 + $0xc0] sm:$0xff]  ;;  %676 = vmatpush.msrb.mxu3 %v545_v49  ;;  %v414_v47 = vld [vmem:[#allocation10 + $0x2c8] sm:$0xff]  ;;  %v2515_v49 = vld [vmem:[#allocation7] sm:$0xf] }
  0x4f   :  { %v413_v51 = vld [vmem:[#allocation10 + $0x2c0] sm:$0xff]  ;;  %590 = vmatpush.msrb.mxu0 %v349_v50  ;;  %v486_v48 = vld [vmem:[#allocation10 + $0x508] sm:$0xff] }
  0x50   :  { %v477_v52 = vld [vmem:[#allocation10 + $0x4c0] sm:$0xff]  ;;  %619 = vmatpush.msrb.mxu1 %v413_v51  ;;  %v346_v50 = vld [vmem:[#allocation10 + $0xa8] sm:$0xff] }
  0x51   :  { %v541_v53 = vld [vmem:[#allocation10 + $0x6c0] sm:$0xff]  ;;  %648 = vmatpush.msrb.mxu2 %v477_v52  ;;  %v550_v51 = vld [vmem:[#allocation10 + $0x708] sm:$0xff] }
  0x52   :  { %v345_v54 = vld [vmem:[#allocation10 + $0xa0] sm:$0xff]  ;;  %677 = vmatpush.msrb.mxu3 %v541_v53  ;;  %v410_v52 = vld [vmem:[#allocation10 + $0x2a8] sm:$0xff]  ;;  %v168_v53 = vperm.slane %v2515_v49, 0 }
  0x53   :  { %v409_v55 = vld [vmem:[#allocation10 + $0x2a0] sm:$0xff]  ;;  %591 = vmatpush.msrb.mxu0 %v345_v54  ;;  %v169_v54 = vperm.slane %v2515_v49, 1 }
  0x54   :  { %v341_v56 = vld [vmem:[#allocation10 + $0x80] sm:$0xff]  ;;  %620 = vmatpush.msrb.mxu1 %v409_v55  ;;  %v482_v55 = vld [vmem:[#allocation10 + $0x4e8] sm:$0xff] }
  0x55   :  { %v405_v57 = vld [vmem:[#allocation10 + $0x280] sm:$0xff]  ;;  %592 = vmatpush.msrb.mxu0 %v341_v56  ;;  %v342_v56 = vld [vmem:[#allocation10 + $0x88] sm:$0xff] }
  0x56   :  { %v337_v58 = vld [vmem:[#allocation10 + $0x60] sm:$0xff]  ;;  %621 = vmatpush.msrb.mxu1 %v405_v57  ;;  %v406_v57 = vld [vmem:[#allocation10 + $0x288] sm:$0xff] }
  0x57   :  { %v401_v59 = vld [vmem:[#allocation10 + $0x260] sm:$0xff]  ;;  %593 = vmatpush.msrb.mxu0 %v337_v58  ;;  %v546_v58 = vld [vmem:[#allocation10 + $0x6e8] sm:$0xff] }
  0x58   :  { %622 = vmatpush.msrb.mxu1 %v401_v59  ;;  %v333_v60 = vld [vmem:[#allocation10 + $0x40] sm:$0xff]  ;;  %v478_v59 = vld [vmem:[#allocation10 + $0x4c8] sm:$0xff] }
  0x59   :  { %v397_v61 = vld [vmem:[#allocation10 + $0x240] sm:$0xff]  ;;  %594 = vmatpush.msrb.mxu0 %v333_v60  ;;  %v338_v60 = vld [vmem:[#allocation10 + $0x68] sm:$0xff] }
  0x5a   :  { %v473_v62 = vld [vmem:[#allocation10 + $0x4a0] sm:$0xff]  ;;  %623 = vmatpush.msrb.mxu1 %v397_v61  ;;  %v402_v61 = vld [vmem:[#allocation10 + $0x268] sm:$0xff] }
  0x5b   :  { %v537_v63 = vld [vmem:[#allocation10 + $0x6a0] sm:$0xff]  ;;  %649 = vmatpush.msrb.mxu2 %v473_v62  ;;  %v542_v62 = vld [vmem:[#allocation10 + $0x6c8] sm:$0xff] }
  0x5c   :  { %678 = vmatpush.msrb.mxu3 %v537_v63  ;;  %v329_v0 = vld [vmem:[#allocation10 + $0x20] sm:$0xff]  ;;  %v474_v63 = vld [vmem:[#allocation10 + $0x4a8] sm:$0xff] }
  0x5d   :  { %v393_v1 = vld [vmem:[#allocation10 + $0x220] sm:$0xff]  ;;  %595 = vmatpush.msrb.mxu0 %v329_v0 }
  0x5e   :  { %v469_v2 = vld [vmem:[#allocation10 + $0x480] sm:$0xff]  ;;  %624 = vmatpush.msrb.mxu1 %v393_v1 }
  0x5f   :  { %v533_v3 = vld [vmem:[#allocation10 + $0x680] sm:$0xff]  ;;  %650 = vmatpush.msrb.mxu2 %v469_v2  ;;  %v334_v2 = vld [vmem:[#allocation10 + $0x48] sm:$0xff] }
  0x60   :  { %v325_v4 = vld [vmem:[#allocation10] sm:$0xff]  ;;  %679 = vmatpush.msrb.mxu3 %v533_v3  ;;  %v538_v3 = vld [vmem:[#allocation10 + $0x6a8] sm:$0xff] }
  0x61   :  { %v389_v5 = vld [vmem:[#allocation10 + $0x200] sm:$0xff]  ;;  %596 = vmatpush.msrb.mxu0 %v325_v4 }
  0x62   :  { %v465_v6 = vld [vmem:[#allocation10 + $0x460] sm:$0xff]  ;;  %625 = vmatpush.msrb.mxu1 %v389_v5 }
  0x63   :  { %v529_v7 = vld [vmem:[#allocation10 + $0x660] sm:$0xff]  ;;  %651 = vmatpush.msrb.mxu2 %v465_v6  ;;  %697 = vmatpush.msra.mxu0 %v386_v10  ;;  %v398_v6 = vld [vmem:[#allocation10 + $0x248] sm:$0xff] }
  0x64   :  { %680 = vmatpush.msrb.mxu3 %v529_v7  ;;  %v461_v8 = vld [vmem:[#allocation10 + $0x440] sm:$0xff]  ;;  %726 = vmatpush.msra.mxu1 %v450_v11  ;;  %v470_v7 = vld [vmem:[#allocation10 + $0x488] sm:$0xff]  ;;  %v170_v11 = vperm.slane %v2515_v49, 2 }
  0x65   :  { %v525_v9 = vld [vmem:[#allocation10 + $0x640] sm:$0xff]  ;;  %652 = vmatpush.msrb.mxu2 %v461_v8  ;;  %698 = vmatpush.msra.mxu0 %v382_v14  ;;  %v330_v8 = vld [vmem:[#allocation10 + $0x28] sm:$0xff] }
  0x66   :  { %681 = vmatpush.msrb.mxu3 %v525_v9  ;;  %v457_v12 = vld [vmem:[#allocation10 + $0x420] sm:$0xff]  ;;  %727 = vmatpush.msra.mxu1 %v446_v15  ;;  %v534_v14 = vld [vmem:[#allocation10 + $0x688] sm:$0xff] }
  0x67   :  { %v521_v13 = vld [vmem:[#allocation10 + $0x620] sm:$0xff]  ;;  %653 = vmatpush.msrb.mxu2 %v457_v12  ;;  %699 = vmatpush.msra.mxu0 %v378_v18  ;;  %v171_v12 = vperm.slane %v2515_v49, 3  ;;  %v326_v18 = vld [vmem:[#allocation10 + $0x8] sm:$0xff]  ;;  %v511_v49 = vld [vmem:[#allocation10 + $0x5d0] sm:$0xff] }
  0x68   :  { %682 = vmatpush.msrb.mxu3 %v521_v13  ;;  %v453_v16 = vld [vmem:[#allocation10 + $0x400] sm:$0xff]  ;;  %728 = vmatpush.msra.mxu1 %v442_v19  ;;  %v394_v13 = vld [vmem:[#allocation10 + $0x228] sm:$0xff] }
  0x69   :  { %v517_v17 = vld [vmem:[#allocation10 + $0x600] sm:$0xff]  ;;  %654 = vmatpush.msrb.mxu2 %v453_v16  ;;  %700 = vmatpush.msra.mxu0 %v374_v21  ;;  %v390_v19 = vld [vmem:[#allocation10 + $0x208] sm:$0xff] }
  0x6a   :  { %683 = vmatpush.msrb.mxu3 %v517_v17  ;;  %729 = vmatpush.msra.mxu1 %v438_v22  ;;  %v466_v17 = vld [vmem:[#allocation10 + $0x468] sm:$0xff] }
  0x6b   :  { %755 = vmatpush.msra.mxu2 %v514_v20  ;;  %701 = vmatpush.msra.mxu0 %v370_v25  ;;  %v530_v20 = vld [vmem:[#allocation10 + $0x668] sm:$0xff] }
  0x6c   :  { %784 = vmatpush.msra.mxu3 %v578_v23  ;;  %730 = vmatpush.msra.mxu1 %v434_v26  ;;  %v462_v23 = vld [vmem:[#allocation10 + $0x448] sm:$0xff] }
  0x6d   :  { %756 = vmatpush.msra.mxu2 %v510_v24  ;;  %702 = vmatpush.msra.mxu0 %v366_v29  ;;  %v387_v24 = vld [vmem:[#allocation10 + $0x1f0] sm:$0xff]  ;;  %v526_v29 = vld [vmem:[#allocation10 + $0x648] sm:$0xff] }
  0x6e   :  { %785 = vmatpush.msra.mxu3 %v574_v27  ;;  %731 = vmatpush.msra.mxu1 %v430_v30  ;;  %v451_v30 = vld [vmem:[#allocation10 + $0x3f0] sm:$0xff] }
  0x6f   :  { %757 = vmatpush.msra.mxu2 %v506_v28  ;;  %703 = vmatpush.msra.mxu0 %v362_v33  ;;  %v458_v33 = vld [vmem:[#allocation10 + $0x428] sm:$0xff] }
  0x70   :  { %786 = vmatpush.msra.mxu3 %v570_v31  ;;  %732 = vmatpush.msra.mxu1 %v426_v34  ;;  %v383_v34 = vld [vmem:[#allocation10 + $0x1d0] sm:$0xff] }
  0x71   :  { %758 = vmatpush.msra.mxu2 %v502_v32  ;;  %704 = vmatpush.msra.mxu0 %v358_v37 }
  0x72   :  { %787 = vmatpush.msra.mxu3 %v566_v35  ;;  %733 = vmatpush.msra.mxu1 %v422_v38 }
  0x73   :  { %759 = vmatpush.msra.mxu2 %v498_v36  ;;  %705 = vmatpush.msra.mxu0 %v354_v41  ;;  %v522_v41 = vld [vmem:[#allocation10 + $0x628] sm:$0xff] }
  0x74   :  { %788 = vmatpush.msra.mxu3 %v562_v39  ;;  %734 = vmatpush.msra.mxu1 %v418_v42  ;;  %v447_v42 = vld [vmem:[#allocation10 + $0x3d0] sm:$0xff] }
  0x75   :  { %760 = vmatpush.msra.mxu2 %v494_v40  ;;  %706 = vmatpush.msra.mxu0 %v350_v45  ;;  %v454_v45 = vld [vmem:[#allocation10 + $0x408] sm:$0xff] }
  0x76   :  { %789 = vmatpush.msra.mxu3 %v558_v43  ;;  %735 = vmatpush.msra.mxu1 %v414_v47  ;;  %v518_v47 = vld [vmem:[#allocation10 + $0x608] sm:$0xff] }
  0x77   :  { %761 = vmatpush.msra.mxu2 %v490_v44  ;;  %707 = vmatpush.msra.mxu0 %v346_v50 }
  0x78   :  { %790 = vmatpush.msra.mxu3 %v554_v46  ;;  %736 = vmatpush.msra.mxu1 %v410_v52  ;;  %v379_v46 = vld [vmem:[#allocation10 + $0x1b0] sm:$0xff]  ;;  %v2593_v52 = vld [vmem:[#allocation8] sm:$0xf] }
  0x79   :  { %762 = vmatpush.msra.mxu2 %v486_v48  ;;  %708 = vmatpush.msra.mxu0 %v342_v56  ;;  %v443_v48 = vld [vmem:[#allocation10 + $0x3b0] sm:$0xff] }
  0x7a   :  { %791 = vmatpush.msra.mxu3 %v550_v51  ;;  %737 = vmatpush.msra.mxu1 %v406_v57  ;;  %v309_v57 = vperm.slane %v2593_v52, 0 }
  0x7b   :  { %763 = vmatpush.msra.mxu2 %v482_v55  ;;  %709 = vmatpush.msra.mxu0 %v338_v60  ;;  %v579_v60 = vld [vmem:[#allocation10 + $0x7f0] sm:$0xff] }
  0x7c   :  { %792 = vmatpush.msra.mxu3 %v546_v58  ;;  %738 = vmatpush.msra.mxu1 %v402_v61  ;;  %v310_v58 = vperm.slane %v2593_v52, 1  ;;  %v2418_v61 = vmov 0.2  }
  0x7d   :  { %764 = vmatpush.msra.mxu2 %v478_v59  ;;  %710 = vmatpush.msra.mxu0 %v334_v2  ;;  %v439_v59 = vld [vmem:[#allocation10 + $0x390] sm:$0xff] }
  0x7e   :  { %793 = vmatpush.msra.mxu3 %v542_v62  ;;  %739 = vmatpush.msra.mxu1 %v398_v6  ;;  %v371_v6 = vld [vmem:[#allocation10 + $0x170] sm:$0xff] }
  0x7f   :  { %765 = vmatpush.msra.mxu2 %v474_v63  ;;  %711 = vmatpush.msra.mxu0 %v330_v8  ;;  %v575_v8 = vld [vmem:[#allocation10 + $0x7d0] sm:$0xff] }
  0x80   :  { %794 = vmatpush.msra.mxu3 %v538_v3  ;;  %740 = vmatpush.msra.mxu1 %v394_v13  ;;  %v312_v13 = vperm.slane %v2593_v52, 3 }
  0x81   :  { %766 = vmatpush.msra.mxu2 %v470_v7  ;;  %712 = vmatpush.msra.mxu0 %v326_v18  ;;  %v435_v7 = vld [vmem:[#allocation10 + $0x370] sm:$0xff] }
  0x82   :  { %795 = vmatpush.msra.mxu3 %v534_v14  ;;  %741 = vmatpush.msra.mxu1 %v390_v19  ;;  %v571_v14 = vld [vmem:[#allocation10 + $0x7b0] sm:$0xff] }
  0x83   :  { %767 = vmatpush.msra.mxu2 %v466_v17  ;;  %v503_v17 = vld [vmem:[#allocation10 + $0x590] sm:$0xff] }
  0x84   :  { %796 = vmatpush.msra.mxu3 %v530_v20  ;;  %v363_v20 = vld [vmem:[#allocation10 + $0x130] sm:$0xff] }
  0x85   :  { %768 = vmatpush.msra.mxu2 %v462_v23 }
  0x86   :  { %797 = vmatpush.msra.mxu3 %v526_v29 }
  0x87   :  { %769 = vmatpush.msra.mxu2 %v458_v33  ;;  %v495_v33 = vld [vmem:[#allocation10 + $0x550] sm:$0xff] }
  0x88   :  { %798 = vmatpush.msra.mxu3 %v522_v41 }
  0x89   :  { %770 = vmatpush.msra.mxu2 %v454_v45  ;;  %v415_v45 = vld [vmem:[#allocation10 + $0x2d0] sm:$0xff] }
  0x8a   :  { %799 = vmatpush.msra.mxu3 %v518_v47  ;;  %v487_v47 = vld [vmem:[#allocation10 + $0x510] sm:$0xff] }
  0xaa   :  { %v200_v0 = vpop.f32.mrf.mxu0  ;;  %v223_v1 = vpop.f32.mrf.mxu1 }
  0xab   :  { %v2521_v4 = vadd.f32 %v200_v0, %v168_v53  ;;  %v2525_v5 = vadd.f32 %v223_v1, %v169_v54 }
  0xad   :  { %v283_v9 = vmul.f32 0.2, %v2521_v4  ;;  %v284_v10 = vmul.f32 0.2, %v2525_v5  ;;  %vm275_vm1 = vcmp.gt.f32.partialorder %v2521_v4, 0.0  ;;  %vm276_vm2 = vcmp.gt.f32.partialorder %v2525_v5, 0.0 }
  0xae   :  { %v299_v62 = vsel %vm275_vm1, 1.0, %v2418_v61  ;;  %v300_v63 = vsel %vm276_vm2, 1.0, %v2418_v61 }
  0xaf   :  { %v2536_v15 = vsel %vm275_vm1, %v2521_v4, %v283_v9  ;;  %v2541_v16 = vsel %vm276_vm2, %v2525_v5, %v284_v10  ;;  %v2625_v4 = vmul.f32 %v309_v57, %v299_v62  ;;  %v2627_v5 = vmul.f32 %v310_v58, %v300_v63  ;;  %v507_v9 = vld [vmem:[#allocation10 + $0x5b0] sm:$0xff] }
  0xb0   :  { %597 = vmatmul.f32.vlgmr.msrb.gmra.mxu0 %v2536_v15  ;;  %626 = vmatmul.f32.vlgmr.msrb.gmra.mxu1 %v2541_v16  ;;  %v367_v10 = vld [vmem:[#allocation10 + $0x150] sm:$0xff] }
  0xb1   :  { %v246_v21 = vpop.f32.mrf.mxu2  ;;  %v269_v22 = vpop.f32.mrf.mxu3  ;;  %813 = vmatpush.msrb.mxu0 %v387_v24  ;;  %842 = vmatpush.msrb.mxu1 %v451_v30  ;;  %v567_v24 = vld [vmem:[#allocation10 + $0x790] sm:$0xff] }
  0xb2   :  { %v2547_v25 = vadd.f32 %v246_v21, %v170_v11  ;;  %v2551_v26 = vadd.f32 %v269_v22, %v171_v12  ;;  %v203_v27 = vpop.f32.mrf.mxu0  ;;  %v427_v21 = vld [vmem:[#allocation10 + $0x330] sm:$0xff] }
  0xb3   :  { %v226_v28 = vpop.f32.mrf.mxu1  ;;  %v2555_v31 = vadd.f32 %v203_v27, %v168_v53  ;;  %814 = vmatpush.msrb.mxu0 %v383_v34  ;;  %843 = vmatpush.msrb.mxu1 %v447_v42  ;;  %v515_v53 = vld [vmem:[#allocation10 + $0x5f0] sm:$0xff] }
  0xb4   :  { %v2559_v32 = vadd.f32 %v226_v28, %v169_v54  ;;  %v285_v35 = vmul.f32 0.2, %v2547_v25  ;;  %v286_v36 = vmul.f32 0.2, %v2551_v26  ;;  %vm277_vm3 = vcmp.gt.f32.partialorder %v2547_v25, 0.0  ;;  %v375_v54 = vld [vmem:[#allocation10 + $0x190] sm:$0xff] }
  0xb5   :  { %vm278_vm4 = vcmp.gt.f32.partialorder %v2551_v26, 0.0  ;;  %v287_v37 = vmul.f32 0.2, %v2555_v31  ;;  %vm279_vm5 = vcmp.gt.f32.partialorder %v2555_v31, 0.0  ;;  %815 = vmatpush.msrb.mxu0 %v379_v46  ;;  %844 = vmatpush.msrb.mxu1 %v443_v48  ;;  %v301_v18 = vsel %vm277_vm3, 1.0, %v2418_v61  ;;  %v359_v30 = vld [vmem:[#allocation10 + $0x110] sm:$0xff] }
  0xb6   :  { %v288_v38 = vmul.f32 0.2, %v2559_v32  ;;  %v2570_v39 = vsel %vm277_vm3, %v2547_v25, %v285_v35  ;;  %v2575_v40 = vsel %vm278_vm4, %v2551_v26, %v286_v36  ;;  %vm280_vm6 = vcmp.gt.f32.partialorder %v2559_v32, 0.0  ;;  %v499_v25 = vld [vmem:[#allocation10 + $0x570] sm:$0xff] }
  0xb7   :  { %655 = vmatmul.f32.vlgmr.msrb.gmra.mxu2 %v2570_v39  ;;  %684 = vmatmul.f32.vlgmr.msrb.gmra.mxu3 %v2575_v40  ;;  %v2584_v43 = vsel %vm279_vm5, %v2555_v31, %v287_v37  ;;  %v302_v19 = vsel %vm278_vm4, 1.0, %v2418_v61  ;;  %v303_v22 = vsel %vm279_vm5, 1.0, %v2418_v61  ;;  %v304_v23 = vsel %vm280_vm6, 1.0, %v2418_v61  ;;  %v423_v31 = vld [vmem:[#allocation10 + $0x310] sm:$0xff] }
  0xb8   :  { %v2589_v44 = vsel %vm280_vm6, %v2559_v32, %v288_v38  ;;  %600 = vmatmul.f32.gmra.mxu0 %v2584_v43  ;;  %871 = vmatpush.msrb.mxu2 %v515_v53  ;;  %v2649_v27 = vmul.f32 %v312_v13, %v302_v19  ;;  %v2651_v28 = vmul.f32 %v309_v57, %v303_v22  ;;  %v563_v32 = vld [vmem:[#allocation10 + $0x770] sm:$0xff]  ;;  %v452_v19 = vld [vmem:[#allocation10 + $0x3f8] sm:$0xff] }
  0xb9   :  { %629 = vmatmul.f32.gmra.mxu1 %v2589_v44  ;;  %816 = vmatpush.msrb.mxu0 %v375_v54  ;;  %v2653_v29 = vmul.f32 %v310_v58, %v304_v23  ;;  %v355_v34 = vld [vmem:[#allocation10 + $0xf0] sm:$0xff]  ;;  %v384_v22 = vld [vmem:[#allocation10 + $0x1d8] sm:$0xff] }
  0xba   :  { %v249_v50 = vpop.f32.mrf.mxu2  ;;  %v272_v51 = vpop.f32.mrf.mxu3  ;;  %845 = vmatpush.msrb.mxu1 %v439_v59  ;;  %900 = vmatpush.msrb.mxu3 %v579_v60  ;;  %v419_v35 = vld [vmem:[#allocation10 + $0x2f0] sm:$0xff]  ;;  %v448_v23 = vld [vmem:[#allocation10 + $0x3d8] sm:$0xff] }
  0xbb   :  { %v2597_v55 = vadd.f32 %v249_v50, %v170_v11  ;;  %v2601_v56 = vadd.f32 %v272_v51, %v171_v12  ;;  %872 = vmatpush.msrb.mxu2 %v511_v49  ;;  %v431_v11 = vld [vmem:[#allocation10 + $0x350] sm:$0xff]  ;;  %v311_v12 = vperm.slane %v2593_v52, 2  ;;  %817 = vmatpush.msrb.mxu0 %v371_v6 }
  0xbc   :  { %846 = vmatpush.msrb.mxu1 %v435_v7  ;;  %901 = vmatpush.msrb.mxu3 %v575_v8  ;;  %v559_v36 = vld [vmem:[#allocation10 + $0x750] sm:$0xff] }
  0xbd   :  { %v289_v0 = vmul.f32 0.2, %v2597_v55  ;;  %v290_v1 = vmul.f32 0.2, %v2601_v56  ;;  %vm281_vm7 = vcmp.gt.f32.partialorder %v2597_v55, 0.0  ;;  %vm282_vm8 = vcmp.gt.f32.partialorder %v2601_v56, 0.0  ;;  %873 = vmatpush.msrb.mxu2 %v507_v9  ;;  %818 = vmatpush.msrb.mxu0 %v367_v10 }
  0xbe   :  { %847 = vmatpush.msrb.mxu1 %v431_v11  ;;  %902 = vmatpush.msrb.mxu3 %v571_v14  ;;  %v2647_v26 = vmul.f32 %v311_v12, %v301_v18  ;;  %v491_v37 = vld [vmem:[#allocation10 + $0x530] sm:$0xff]  ;;  %v305_v38 = vsel %vm281_vm7, 1.0, %v2418_v61  ;;  %v306_v41 = vsel %vm282_vm8, 1.0, %v2418_v61  ;;  %v388_v18 = vld [vmem:[#allocation10 + $0x1f8] sm:$0xff] }
  0xbf   :  { %v2618_v2 = vsel %vm281_vm7, %v2597_v55, %v289_v0  ;;  %v2623_v3 = vsel %vm282_vm8, %v2601_v56, %v290_v1  ;;  %874 = vmatpush.msrb.mxu2 %v503_v17  ;;  %819 = vmatpush.msrb.mxu0 %v363_v20  ;;  %v351_v42 = vld [vmem:[#allocation10 + $0xd0] sm:$0xff]  ;;  %v2665_v48 = vmul.f32 %v311_v12, %v305_v38  ;;  %v436_v38 = vld [vmem:[#allocation10 + $0x378] sm:$0xff] }
  0xc0   :  { %658 = vmatmul.f32.gmra.mxu2 %v2618_v2  ;;  %687 = vmatmul.f32.gmra.mxu3 %v2623_v3  ;;  %v555_v46 = vld [vmem:[#allocation10 + $0x730] sm:$0xff]  ;;  %v2667_v50 = vmul.f32 %v312_v13, %v306_v41  ;;  %v576_v41 = vld [vmem:[#allocation10 + $0x7d8] sm:$0xff] }
  0xc1   :  { %603 = vmatmul.f32.gmra.mxu0 %v2625_v4  ;;  %632 = vmatmul.f32.gmra.mxu1 %v2627_v5  ;;  %v347_v51 = vld [vmem:[#allocation10 + $0xb0] sm:$0xff] }
  0xc2   :  { %848 = vmatpush.msrb.mxu1 %v427_v21  ;;  %903 = vmatpush.msrb.mxu3 %v567_v24  ;;  %v411_v52 = vld [vmem:[#allocation10 + $0x2b0] sm:$0xff] }
  0xc3   :  { %875 = vmatpush.msrb.mxu2 %v499_v25  ;;  %820 = vmatpush.msrb.mxu0 %v359_v30  ;;  %v551_v53 = vld [vmem:[#allocation10 + $0x710] sm:$0xff]  ;;  %v380_v30 = vld [vmem:[#allocation10 + $0x1b8] sm:$0xff] }
  0xc4   :  { %849 = vmatpush.msrb.mxu1 %v423_v31  ;;  %904 = vmatpush.msrb.mxu3 %v563_v32  ;;  %v483_v54 = vld [vmem:[#allocation10 + $0x4f0] sm:$0xff]  ;;  %v444_v31 = vld [vmem:[#allocation10 + $0x3b8] sm:$0xff] }
  0xc5   :  { %876 = vmatpush.msrb.mxu2 %v495_v33  ;;  %821 = vmatpush.msrb.mxu0 %v355_v34  ;;  %v343_v55 = vld [vmem:[#allocation10 + $0x90] sm:$0xff]  ;;  %v516_v32 = vld [vmem:[#allocation10 + $0x5f8] sm:$0xff] }
  0xc6   :  { %850 = vmatpush.msrb.mxu1 %v419_v35  ;;  %905 = vmatpush.msrb.mxu3 %v559_v36  ;;  %v407_v56 = vld [vmem:[#allocation10 + $0x290] sm:$0xff]  ;;  %v376_v33 = vld [vmem:[#allocation10 + $0x198] sm:$0xff] }
  0xc7   :  { %877 = vmatpush.msrb.mxu2 %v491_v37  ;;  %822 = vmatpush.msrb.mxu0 %v351_v42  ;;  %v547_v57 = vld [vmem:[#allocation10 + $0x6f0] sm:$0xff]  ;;  %v440_v34 = vld [vmem:[#allocation10 + $0x398] sm:$0xff] }
  0xc8   :  { %661 = vmatmul.f32.gmra.mxu2 %v2647_v26  ;;  %690 = vmatmul.f32.gmra.mxu3 %v2649_v27  ;;  %v479_v58 = vld [vmem:[#allocation10 + $0x4d0] sm:$0xff]  ;;  %v580_v35 = vld [vmem:[#allocation10 + $0x7f8] sm:$0xff] }
  0xc9   :  { %606 = vmatmul.f32.gmra.mxu0 %v2651_v28  ;;  %635 = vmatmul.f32.gmra.mxu1 %v2653_v29  ;;  %v339_v59 = vld [vmem:[#allocation10 + $0x70] sm:$0xff]  ;;  %v512_v36 = vld [vmem:[#allocation10 + $0x5d8] sm:$0xff] }
  0xca   :  { %851 = vmatpush.msrb.mxu1 %v415_v45  ;;  %906 = vmatpush.msrb.mxu3 %v555_v46  ;;  %v403_v60 = vld [vmem:[#allocation10 + $0x270] sm:$0xff]  ;;  %v372_v37 = vld [vmem:[#allocation10 + $0x178] sm:$0xff] }
  0xcb   :  { %878 = vmatpush.msrb.mxu2 %v487_v47  ;;  %823 = vmatpush.msrb.mxu0 %v347_v51  ;;  %v543_v62 = vld [vmem:[#allocation10 + $0x6d0] sm:$0xff]  ;;  %v508_v42 = vld [vmem:[#allocation10 + $0x5b8] sm:$0xff] }
  0xcc   :  { %852 = vmatpush.msrb.mxu1 %v411_v52  ;;  %907 = vmatpush.msrb.mxu3 %v551_v53  ;;  %v475_v63 = vld [vmem:[#allocation10 + $0x4b0] sm:$0xff]  ;;  %v368_v45 = vld [vmem:[#allocation10 + $0x158] sm:$0xff] }
  0xcd   :  { %879 = vmatpush.msrb.mxu2 %v483_v54  ;;  %824 = vmatpush.msrb.mxu0 %v343_v55  ;;  %v335_v49 = vld [vmem:[#allocation10 + $0x50] sm:$0xff]  ;;  %v432_v46 = vld [vmem:[#allocation10 + $0x358] sm:$0xff] }
  0xce   :  { %853 = vmatpush.msrb.mxu1 %v407_v56  ;;  %908 = vmatpush.msrb.mxu3 %v547_v57  ;;  %v399_v0 = vld [vmem:[#allocation10 + $0x250] sm:$0xff]  ;;  %v572_v47 = vld [vmem:[#allocation10 + $0x7b8] sm:$0xff] }
  0xcf   :  { %880 = vmatpush.msrb.mxu2 %v479_v58  ;;  %825 = vmatpush.msrb.mxu0 %v339_v59  ;;  %v539_v1 = vld [vmem:[#allocation10 + $0x6b0] sm:$0xff]  ;;  %v504_v51 = vld [vmem:[#allocation10 + $0x598] sm:$0xff] }
  0xd0   :  { %664 = vmatmul.f32.gmra.mxu2 %v2665_v48  ;;  %693 = vmatmul.f32.gmra.mxu3 %v2667_v50  ;;  %v471_v6 = vld [vmem:[#allocation10 + $0x490] sm:$0xff]  ;;  %v364_v52 = vld [vmem:[#allocation10 + $0x138] sm:$0xff] }
  0xd1   :  { %713 = vmatmul.f32.vlgmr.msra.gmra.mxu0 %v2536_v15  ;;  %742 = vmatmul.f32.vlgmr.msra.gmra.mxu1 %v2541_v16  ;;  %v331_v7 = vld [vmem:[#allocation10 + $0x30] sm:$0xff]  ;;  %v428_v53 = vld [vmem:[#allocation10 + $0x338] sm:$0xff] }
  0xd2   :  { %854 = vmatpush.msrb.mxu1 %v403_v60  ;;  %909 = vmatpush.msrb.mxu3 %v543_v62  ;;  %v395_v8 = vld [vmem:[#allocation10 + $0x230] sm:$0xff]  ;;  %v568_v54 = vld [vmem:[#allocation10 + $0x798] sm:$0xff] }
  0xd3   :  { %881 = vmatpush.msrb.mxu2 %v475_v63  ;;  %826 = vmatpush.msrb.mxu0 %v335_v49  ;;  %v535_v9 = vld [vmem:[#allocation10 + $0x690] sm:$0xff]  ;;  %v500_v55 = vld [vmem:[#allocation10 + $0x578] sm:$0xff] }
  0xd4   :  { %855 = vmatpush.msrb.mxu1 %v399_v0  ;;  %v467_v10 = vld [vmem:[#allocation10 + $0x470] sm:$0xff]  ;;  %910 = vmatpush.msrb.mxu3 %v539_v1  ;;  %v360_v56 = vld [vmem:[#allocation10 + $0x118] sm:$0xff] }
  0xd5   :  { %882 = vmatpush.msrb.mxu2 %v471_v6  ;;  %v327_v11 = vld [vmem:[#allocation10 + $0x10] sm:$0xff]  ;;  %827 = vmatpush.msrb.mxu0 %v331_v7  ;;  %v424_v57 = vld [vmem:[#allocation10 + $0x318] sm:$0xff] }
  0xd6   :  { %v391_v12 = vld [vmem:[#allocation10 + $0x210] sm:$0xff]  ;;  %856 = vmatpush.msrb.mxu1 %v395_v8  ;;  %911 = vmatpush.msrb.mxu3 %v535_v9  ;;  %v564_v58 = vld [vmem:[#allocation10 + $0x778] sm:$0xff] }
  0xd7   :  { %v531_v13 = vld [vmem:[#allocation10 + $0x670] sm:$0xff]  ;;  %883 = vmatpush.msrb.mxu2 %v467_v10  ;;  %828 = vmatpush.msrb.mxu0 %v327_v11  ;;  %v496_v59 = vld [vmem:[#allocation10 + $0x558] sm:$0xff] }
  0xd8   :  { %771 = vmatmul.f32.vlgmr.msra.gmra.mxu2 %v2570_v39  ;;  %800 = vmatmul.f32.vlgmr.msra.gmra.mxu3 %v2575_v40  ;;  %v463_v14 = vld [vmem:[#allocation10 + $0x450] sm:$0xff]  ;;  %v356_v60 = vld [vmem:[#allocation10 + $0xf8] sm:$0xff] }
  0xd9   :  { %716 = vmatmul.f32.gmra.mxu0 %v2584_v43  ;;  %745 = vmatmul.f32.gmra.mxu1 %v2589_v44  ;;  %v527_v17 = vld [vmem:[#allocation10 + $0x650] sm:$0xff]  ;;  %v420_v62 = vld [vmem:[#allocation10 + $0x2f8] sm:$0xff] }
  0xda   :  { %857 = vmatpush.msrb.mxu1 %v391_v12  ;;  %912 = vmatpush.msrb.mxu3 %v531_v13  ;;  %v459_v20 = vld [vmem:[#allocation10 + $0x430] sm:$0xff]  ;;  %v560_v63 = vld [vmem:[#allocation10 + $0x758] sm:$0xff] }
  0xdb   :  { %884 = vmatpush.msrb.mxu2 %v463_v14  ;;  %v523_v21 = vld [vmem:[#allocation10 + $0x630] sm:$0xff]  ;;  %929 = vmatpush.msra.mxu0 %v388_v18  ;;  %v492_v49 = vld [vmem:[#allocation10 + $0x538] sm:$0xff] }
  0xdc   :  { %913 = vmatpush.msrb.mxu3 %v527_v17  ;;  %v455_v24 = vld [vmem:[#allocation10 + $0x410] sm:$0xff]  ;;  %958 = vmatpush.msra.mxu1 %v452_v19  ;;  %v352_v0 = vld [vmem:[#allocation10 + $0xd8] sm:$0xff] }
  0xdd   :  { %885 = vmatpush.msrb.mxu2 %v459_v20  ;;  %v519_v25 = vld [vmem:[#allocation10 + $0x610] sm:$0xff]  ;;  %930 = vmatpush.msra.mxu0 %v384_v22  ;;  %v416_v1 = vld [vmem:[#allocation10 + $0x2d8] sm:$0xff] }
  0xde   :  { %914 = vmatpush.msrb.mxu3 %v523_v21  ;;  %959 = vmatpush.msra.mxu1 %v448_v23  ;;  %v556_v6 = vld [vmem:[#allocation10 + $0x738] sm:$0xff] }
  0xdf   :  { %886 = vmatpush.msrb.mxu2 %v455_v24  ;;  %931 = vmatpush.msra.mxu0 %v380_v30  ;;  %v488_v7 = vld [vmem:[#allocation10 + $0x518] sm:$0xff] }
  0xe0   :  { %774 = vmatmul.f32.gmra.mxu2 %v2618_v2  ;;  %803 = vmatmul.f32.gmra.mxu3 %v2623_v3  ;;  %v348_v8 = vld [vmem:[#allocation10 + $0xb8] sm:$0xff] }
  0xe1   :  { %719 = vmatmul.f32.gmra.mxu0 %v2625_v4  ;;  %748 = vmatmul.f32.gmra.mxu1 %v2627_v5  ;;  %v412_v9 = vld [vmem:[#allocation10 + $0x2b8] sm:$0xff] }
  0xe2   :  { %915 = vmatpush.msrb.mxu3 %v519_v25  ;;  %960 = vmatpush.msra.mxu1 %v444_v31  ;;  %v552_v10 = vld [vmem:[#allocation10 + $0x718] sm:$0xff] }
  0xe3   :  { %987 = vmatpush.msra.mxu2 %v516_v32  ;;  %932 = vmatpush.msra.mxu0 %v376_v33  ;;  %v484_v11 = vld [vmem:[#allocation10 + $0x4f8] sm:$0xff] }
  0xe4   :  { %961 = vmatpush.msra.mxu1 %v440_v34  ;;  %1016 = vmatpush.msra.mxu3 %v580_v35  ;;  %v344_v12 = vld [vmem:[#allocation10 + $0x98] sm:$0xff] }
  0xe5   :  { %988 = vmatpush.msra.mxu2 %v512_v36  ;;  %933 = vmatpush.msra.mxu0 %v372_v37  ;;  %v408_v13 = vld [vmem:[#allocation10 + $0x298] sm:$0xff] }
  0xe6   :  { %962 = vmatpush.msra.mxu1 %v436_v38  ;;  %1017 = vmatpush.msra.mxu3 %v576_v41  ;;  %v548_v14 = vld [vmem:[#allocation10 + $0x6f8] sm:$0xff]  ;;  %v1164_v38 = vld [vmem:[#allocation10 + $0x9e0] sm:$0xff] }
  0xe7   :  { %989 = vmatpush.msra.mxu2 %v508_v42  ;;  %934 = vmatpush.msra.mxu0 %v368_v45  ;;  %v480_v17 = vld [vmem:[#allocation10 + $0x4d8] sm:$0xff]  ;;  %v1160_v45 = vld [vmem:[#allocation10 + $0x9c0] sm:$0xff] }
  0xe8   :  { %777 = vmatmul.f32.gmra.mxu2 %v2647_v26  ;;  %806 = vmatmul.f32.gmra.mxu3 %v2649_v27  ;;  %v340_v18 = vld [vmem:[#allocation10 + $0x78] sm:$0xff] }
  0xe9   :  { %722 = vmatmul.f32.gmra.mxu0 %v2651_v28  ;;  %751 = vmatmul.f32.gmra.mxu1 %v2653_v29  ;;  %v404_v19 = vld [vmem:[#allocation10 + $0x278] sm:$0xff] }
  0xea   :  { %963 = vmatpush.msra.mxu1 %v432_v46  ;;  %1018 = vmatpush.msra.mxu3 %v572_v47  ;;  %v544_v20 = vld [vmem:[#allocation10 + $0x6d8] sm:$0xff] }
  0xeb   :  { %990 = vmatpush.msra.mxu2 %v504_v51  ;;  %935 = vmatpush.msra.mxu0 %v364_v52  ;;  %v476_v21 = vld [vmem:[#allocation10 + $0x4b8] sm:$0xff]  ;;  %v1156_v52 = vld [vmem:[#allocation10 + $0x9a0] sm:$0xff] }
  0xec   :  { %964 = vmatpush.msra.mxu1 %v428_v53  ;;  %1019 = vmatpush.msra.mxu3 %v568_v54  ;;  %v336_v22 = vld [vmem:[#allocation10 + $0x58] sm:$0xff]  ;;  %v1152_v53 = vld [vmem:[#allocation10 + $0x980] sm:$0xff] }
  0xed   :  { %991 = vmatpush.msra.mxu2 %v500_v55  ;;  %936 = vmatpush.msra.mxu0 %v360_v56  ;;  %v400_v23 = vld [vmem:[#allocation10 + $0x258] sm:$0xff]  ;;  %v1148_v54 = vld [vmem:[#allocation10 + $0x960] sm:$0xff] }
  0xee   :  { %965 = vmatpush.msra.mxu1 %v424_v57  ;;  %1020 = vmatpush.msra.mxu3 %v564_v58  ;;  %v540_v24 = vld [vmem:[#allocation10 + $0x6b8] sm:$0xff]  ;;  %v1144_v55 = vld [vmem:[#allocation10 + $0x940] sm:$0xff] }
  0xef   :  { %992 = vmatpush.msra.mxu2 %v496_v59  ;;  %937 = vmatpush.msra.mxu0 %v356_v60  ;;  %v472_v25 = vld [vmem:[#allocation10 + $0x498] sm:$0xff]  ;;  %v1140_v56 = vld [vmem:[#allocation10 + $0x920] sm:$0xff] }
  0xf0   :  { %780 = vmatmul.f32.gmra.mxu2 %v2665_v48  ;;  %809 = vmatmul.f32.gmra.mxu3 %v2667_v50  ;;  %v332_v30 = vld [vmem:[#allocation10 + $0x38] sm:$0xff]  ;;  %v1108_v59 = vld [vmem:[#allocation10 + $0x820] sm:$0xff] }
  0xf1   :  { %829 = vmatmul.f32.vlgmr.msrb.gmra.mxu0 %v2536_v15  ;;  %858 = vmatmul.f32.vlgmr.msrb.gmra.mxu1 %v2541_v16  ;;  %v396_v31 = vld [vmem:[#allocation10 + $0x238] sm:$0xff]  ;;  %v1208_v60 = vld [vmem:[#allocation10 + $0xb40] sm:$0xff] }
  0xf2   :  { %966 = vmatpush.msra.mxu1 %v420_v62  ;;  %1021 = vmatpush.msra.mxu3 %v560_v63  ;;  %v536_v32 = vld [vmem:[#allocation10 + $0x698] sm:$0xff]  ;;  %v1161_v62 = vld [vmem:[#allocation10 + $0x9c8] sm:$0xff]  ;;  %v1204_v63 = vld [vmem:[#allocation10 + $0xb20] sm:$0xff] }
  0xf3   :  { %993 = vmatpush.msra.mxu2 %v492_v49  ;;  %938 = vmatpush.msra.mxu0 %v352_v0  ;;  %v468_v33 = vld [vmem:[#allocation10 + $0x478] sm:$0xff]  ;;  %v1157_v49 = vld [vmem:[#allocation10 + $0x9a8] sm:$0xff] }
  0xf4   :  { %967 = vmatpush.msra.mxu1 %v416_v1  ;;  %1022 = vmatpush.msra.mxu3 %v556_v6  ;;  %v328_v34 = vld [vmem:[#allocation10 + $0x18] sm:$0xff]  ;;  %v1200_v6 = vld [vmem:[#allocation10 + $0xb00] sm:$0xff] }
  0xf5   :  { %994 = vmatpush.msra.mxu2 %v488_v7  ;;  %939 = vmatpush.msra.mxu0 %v348_v8  ;;  %v392_v35 = vld [vmem:[#allocation10 + $0x218] sm:$0xff]  ;;  %v2719_v7 = vld [vmem:[#allocation11] sm:$0xf]  ;;  %v1149_v8 = vld [vmem:[#allocation10 + $0x968] sm:$0xff] }
  0xf6   :  { %968 = vmatpush.msra.mxu1 %v412_v9  ;;  %1023 = vmatpush.msra.mxu3 %v552_v10  ;;  %v532_v36 = vld [vmem:[#allocation10 + $0x678] sm:$0xff]  ;;  %v1192_v10 = vld [vmem:[#allocation10 + $0xac0] sm:$0xff] }
  0xf7   :  { %995 = vmatpush.msra.mxu2 %v484_v11  ;;  %940 = vmatpush.msra.mxu0 %v344_v12  ;;  %v464_v37 = vld [vmem:[#allocation10 + $0x458] sm:$0xff] }
  0xf8   :  { %887 = vmatmul.f32.vlgmr.msrb.gmra.mxu2 %v2570_v39  ;;  %916 = vmatmul.f32.vlgmr.msrb.gmra.mxu3 %v2575_v40  ;;  %v528_v41 = vld [vmem:[#allocation10 + $0x658] sm:$0xff] }
  0xf9   :  { %832 = vmatmul.f32.gmra.mxu0 %v2584_v43  ;;  %861 = vmatmul.f32.gmra.mxu1 %v2589_v44  ;;  %v460_v42 = vld [vmem:[#allocation10 + $0x438] sm:$0xff] }
  0xfa   :  { %969 = vmatpush.msra.mxu1 %v408_v13  ;;  %1024 = vmatpush.msra.mxu3 %v548_v14  ;;  %v524_v46 = vld [vmem:[#allocation10 + $0x638] sm:$0xff]  ;;  %v1145_v13 = vld [vmem:[#allocation10 + $0x948] sm:$0xff] }
  0xfb   :  { %996 = vmatpush.msra.mxu2 %v480_v17  ;;  %941 = vmatpush.msra.mxu0 %v340_v18  ;;  %v456_v47 = vld [vmem:[#allocation10 + $0x418] sm:$0xff]  ;;  %v1047_v17 = vperm.slane %v2719_v7, 0  ;;  %v1188_v18 = vld [vmem:[#allocation10 + $0xaa0] sm:$0xff] }
  0xfc   :  { %970 = vmatpush.msra.mxu1 %v404_v19  ;;  %1025 = vmatpush.msra.mxu3 %v544_v20  ;;  %v520_v51 = vld [vmem:[#allocation10 + $0x618] sm:$0xff]  ;;  %v1141_v19 = vld [vmem:[#allocation10 + $0x928] sm:$0xff] }
  0xfd   :  { %997 = vmatpush.msra.mxu2 %v476_v21  ;;  %942 = vmatpush.msra.mxu0 %v336_v22 }
  0xfe   :  { %971 = vmatpush.msra.mxu1 %v400_v23  ;;  %1026 = vmatpush.msra.mxu3 %v540_v24  ;;  %v1184_v23 = vld [vmem:[#allocation10 + $0xa80] sm:$0xff]  ;;  %v1137_v24 = vld [vmem:[#allocation10 + $0x908] sm:$0xff] }
  0xff   :  { %998 = vmatpush.msra.mxu2 %v472_v25  ;;  %943 = vmatpush.msra.mxu0 %v332_v30  ;;  %v1180_v30 = vld [vmem:[#allocation10 + $0xa60] sm:$0xff] }
 0x100   :  { %890 = vmatmul.f32.gmra.mxu2 %v2618_v2  ;;  %919 = vmatmul.f32.gmra.mxu3 %v2623_v3 }
 0x101   :  { %835 = vmatmul.f32.gmra.mxu0 %v2625_v4  ;;  %864 = vmatmul.f32.gmra.mxu1 %v2627_v5 }
 0x102   :  { %972 = vmatpush.msra.mxu1 %v396_v31  ;;  %1027 = vmatpush.msra.mxu3 %v536_v32  ;;  %v1133_v31 = vld [vmem:[#allocation10 + $0x8e8] sm:$0xff] }
 0x103   :  { %999 = vmatpush.msra.mxu2 %v468_v33  ;;  %944 = vmatpush.msra.mxu0 %v328_v34  ;;  %v1176_v34 = vld [vmem:[#allocation10 + $0xa40] sm:$0xff] }
 0x104   :  { %973 = vmatpush.msra.mxu1 %v392_v35  ;;  %1028 = vmatpush.msra.mxu3 %v532_v36 }
 0x105   :  { %1000 = vmatpush.msra.mxu2 %v464_v37  ;;  %1360 = vmatpush.msrb.mxu0 %v1164_v38  ;;  %v1129_v37 = vld [vmem:[#allocation10 + $0x8c8] sm:$0xff] }
 0x106   :  { %1029 = vmatpush.msra.mxu3 %v528_v41 }
 0x107   :  { %1001 = vmatpush.msra.mxu2 %v460_v42  ;;  %1361 = vmatpush.msrb.mxu0 %v1160_v45  ;;  %v1172_v42 = vld [vmem:[#allocation10 + $0xa20] sm:$0xff]  ;;  %v1125_v45 = vld [vmem:[#allocation10 + $0x8a8] sm:$0xff] }
 0x108   :  { %893 = vmatmul.f32.gmra.mxu2 %v2647_v26  ;;  %922 = vmatmul.f32.gmra.mxu3 %v2649_v27 }
 0x109   :  { %838 = vmatmul.f32.gmra.mxu0 %v2651_v28  ;;  %867 = vmatmul.f32.gmra.mxu1 %v2653_v29 }
 0x10a   :  { %1030 = vmatpush.msra.mxu3 %v524_v46  ;;  %1002 = vmatpush.msra.mxu2 %v456_v47 }
 0x10b   :  { %1362 = vmatpush.msrb.mxu0 %v1156_v52  ;;  %v1168_v52 = vld [vmem:[#allocation10 + $0xa00] sm:$0xff] }
 0x10c   :  { %1031 = vmatpush.msra.mxu3 %v520_v51 }
 0x10d   :  { %1363 = vmatpush.msrb.mxu0 %v1152_v53  ;;  %v1121_v53 = vld [vmem:[#allocation10 + $0x888] sm:$0xff] }
 0x10f   :  { %1364 = vmatpush.msrb.mxu0 %v1148_v54  ;;  %v1292_v54 = vld [vmem:[#allocation10 + $0xde0] sm:$0xff] }
 0x110   :  { %896 = vmatmul.f32.gmra.mxu2 %v2665_v48  ;;  %925 = vmatmul.f32.gmra.mxu3 %v2667_v50 }
 0x111   :  { %945 = vmatmul.f32.vlgmr.msra.gmra.mxu0 %v2536_v15  ;;  %974 = vmatmul.f32.vlgmr.msra.gmra.mxu1 %v2541_v16  ;;  %v1136_v15 = vld [vmem:[#allocation10 + $0x900] sm:$0xff] }
 0x112   :  { %1365 = vmatpush.msrb.mxu0 %v1144_v55  ;;  %v1132_v16 = vld [vmem:[#allocation10 + $0x8e0] sm:$0xff]  ;;  %v1229_v55 = vld [vmem:[#allocation10 + $0xbe8] sm:$0xff]  ;;  %1418 = vmatpush.msrb.mxu2 %v1292_v54 }
 0x114   :  { %1366 = vmatpush.msrb.mxu0 %v1140_v56 }
 0x116   :  { %1367 = vmatpush.msrb.mxu0 %v1136_v15  ;;  %v1288_v15 = vld [vmem:[#allocation10 + $0xdc0] sm:$0xff] }
 0x117   :  { %1419 = vmatpush.msrb.mxu2 %v1288_v15  ;;  %v1138_v15 = vld [vmem:[#allocation10 + $0x910] sm:$0xff] }
 0x118   :  { %1003 = vmatmul.f32.vlgmr.msra.gmra.mxu2 %v2570_v39  ;;  %1032 = vmatmul.f32.vlgmr.msra.gmra.mxu3 %v2575_v40  ;;  %v1128_v39 = vld [vmem:[#allocation10 + $0x8c0] sm:$0xff] }
 0x119   :  { %948 = vmatmul.f32.gmra.mxu0 %v2584_v43  ;;  %977 = vmatmul.f32.gmra.mxu1 %v2589_v44  ;;  %v1124_v40 = vld [vmem:[#allocation10 + $0x8a0] sm:$0xff] }
 0x11a   :  { %1368 = vmatpush.msrb.mxu0 %v1132_v16  ;;  %v1120_v43 = vld [vmem:[#allocation10 + $0x880] sm:$0xff]  ;;  %v1117_v16 = vld [vmem:[#allocation10 + $0x868] sm:$0xff] }
 0x11b   :  { %v1228_v44 = vld [vmem:[#allocation10 + $0xbe0] sm:$0xff] }
 0x11c   :  { %1369 = vmatpush.msrb.mxu0 %v1128_v39  ;;  %1389 = vmatpush.msrb.mxu1 %v1228_v44  ;;  %v1225_v39 = vld [vmem:[#allocation10 + $0xbc8] sm:$0xff]  ;;  %v1284_v44 = vld [vmem:[#allocation10 + $0xda0] sm:$0xff] }
 0x11d   :  { %1420 = vmatpush.msrb.mxu2 %v1284_v44  ;;  %v1134_v44 = vld [vmem:[#allocation10 + $0x8f0] sm:$0xff] }
 0x11e   :  { %1370 = vmatpush.msrb.mxu0 %v1124_v40 }
 0x120   :  { %1006 = vmatmul.f32.gmra.mxu2 %v2618_v2  ;;  %1035 = vmatmul.f32.gmra.mxu3 %v2623_v3  ;;  %v1116_v2 = vld [vmem:[#allocation10 + $0x860] sm:$0xff] }
 0x121   :  { %951 = vmatmul.f32.gmra.mxu0 %v2625_v4  ;;  %980 = vmatmul.f32.gmra.mxu1 %v2627_v5  ;;  %v1224_v3 = vld [vmem:[#allocation10 + $0xbc0] sm:$0xff] }
 0x122   :  { %1371 = vmatpush.msrb.mxu0 %v1120_v43  ;;  %v1112_v4 = vld [vmem:[#allocation10 + $0x840] sm:$0xff]  ;;  %1390 = vmatpush.msrb.mxu1 %v1224_v3 }
 0x123   :  { %v1220_v5 = vld [vmem:[#allocation10 + $0xba0] sm:$0xff] }
 0x124   :  { %1372 = vmatpush.msrb.mxu0 %v1116_v2  ;;  %1391 = vmatpush.msrb.mxu1 %v1220_v5  ;;  %v1221_v5 = vld [vmem:[#allocation10 + $0xba8] sm:$0xff] }
 0x126   :  { %1373 = vmatpush.msrb.mxu0 %v1112_v4  ;;  %v1113_v4 = vld [vmem:[#allocation10 + $0x848] sm:$0xff] }
 0x128   :  { %1009 = vmatmul.f32.gmra.mxu2 %v2647_v26  ;;  %1038 = vmatmul.f32.gmra.mxu3 %v2649_v27  ;;  %v1216_v26 = vld [vmem:[#allocation10 + $0xb80] sm:$0xff] }
 0x129   :  { %954 = vmatmul.f32.gmra.mxu0 %v2651_v28  ;;  %983 = vmatmul.f32.gmra.mxu1 %v2653_v29  ;;  %v1104_v27 = vld [vmem:[#allocation10 + $0x800] sm:$0xff]  ;;  %v1165_v29 = vld [vmem:[#allocation10 + $0x9e8] sm:$0xff] }
 0x12a   :  { %v1212_v28 = vld [vmem:[#allocation10 + $0xb60] sm:$0xff]  ;;  %1374 = vmatpush.msrb.mxu0 %v1108_v59  ;;  %1392 = vmatpush.msrb.mxu1 %v1216_v26  ;;  %v1109_v59 = vld [vmem:[#allocation10 + $0x828] sm:$0xff] }
 0x12b   :  { %v1280_v26 = vld [vmem:[#allocation10 + $0xd80] sm:$0xff] }
 0x12c   :  { %1375 = vmatpush.msrb.mxu0 %v1104_v27  ;;  %1393 = vmatpush.msrb.mxu1 %v1212_v28  ;;  %v1217_v27 = vld [vmem:[#allocation10 + $0xb88] sm:$0xff] }
 0x12d   :  { %v598_v57 = vpop.f32.mrf.mxu0  ;;  %v627_v58 = vpop.f32.mrf.mxu1  ;;  %1421 = vmatpush.msrb.mxu2 %v1280_v26  ;;  %v1236_v26 = vld [vmem:[#allocation10 + $0xc20] sm:$0xff] }
 0x12e   :  { %1476 = vmatpush.msra.mxu0 %v1165_v29  ;;  %1394 = vmatpush.msrb.mxu1 %v1208_v60  ;;  %v628_v9 = vadd.f32 %v627_v58, %v598_v57 }
 0x130   :  { %1012 = vmatmul.f32.gmra.mxu2 %v2665_v48  ;;  %1041 = vmatmul.f32.gmra.mxu3 %v2667_v50  ;;  %v1153_v48 = vld [vmem:[#allocation10 + $0x988] sm:$0xff]  ;;  %v1196_v50 = vld [vmem:[#allocation10 + $0xae0] sm:$0xff] }
 0x131   :  { %1477 = vmatpush.msra.mxu0 %v1161_v62  ;;  %1395 = vmatpush.msrb.mxu1 %v1204_v63  ;;  %v1105_v62 = vld [vmem:[#allocation10 + $0x808] sm:$0xff]  ;;  %v1276_v63 = vld [vmem:[#allocation10 + $0xd60] sm:$0xff] }
 0x132   :  { %1422 = vmatpush.msrb.mxu2 %v1276_v63 }
 0x133   :  { %1478 = vmatpush.msra.mxu0 %v1157_v49  ;;  %1396 = vmatpush.msrb.mxu1 %v1200_v6  ;;  %v1213_v49 = vld [vmem:[#allocation10 + $0xb68] sm:$0xff] }
 0x134   :  { %v1209_v6 = vld [vmem:[#allocation10 + $0xb48] sm:$0xff] }
 0x135   :  { %v601_v0 = vpop.f32.mrf.mxu0  ;;  %1479 = vmatpush.msra.mxu0 %v1153_v48  ;;  %1397 = vmatpush.msrb.mxu1 %v1196_v50 }
 0x136   :  { %v630_v1 = vpop.f32.mrf.mxu1 }
 0x137   :  { %1480 = vmatpush.msra.mxu0 %v1149_v8  ;;  %1398 = vmatpush.msrb.mxu1 %v1192_v10  ;;  %v631_v32 = vadd.f32 %v630_v1, %v601_v0  ;;  %v1166_v0 = vld [vmem:[#allocation10 + $0x9f0] sm:$0xff]  ;;  %v1272_v1 = vld [vmem:[#allocation10 + $0xd40] sm:$0xff] }
 0x138   :  { %v1268_v8 = vld [vmem:[#allocation10 + $0xd20] sm:$0xff]  ;;  %1423 = vmatpush.msrb.mxu2 %v1272_v1  ;;  %v1169_v1 = vld [vmem:[#allocation10 + $0xa08] sm:$0xff] }
 0x139   :  { %1481 = vmatpush.msra.mxu0 %v1145_v13  ;;  %1399 = vmatpush.msrb.mxu1 %v1188_v18  ;;  %v1205_v13 = vld [vmem:[#allocation10 + $0xb28] sm:$0xff]  ;;  %v1264_v18 = vld [vmem:[#allocation10 + $0xd00] sm:$0xff] }
 0x13a   :  { %v656_v11 = vpop.f32.mrf.mxu2  ;;  %v685_v12 = vpop.f32.mrf.mxu3  ;;  %1424 = vmatpush.msrb.mxu2 %v1268_v8 }
 0x13b   :  { %v657_v14 = vadd.f32 %v656_v11, %v628_v9  ;;  %1482 = vmatpush.msra.mxu0 %v1141_v19  ;;  %1400 = vmatpush.msrb.mxu1 %v1184_v23  ;;  %v1201_v19 = vld [vmem:[#allocation10 + $0xb08] sm:$0xff]  ;;  %v1154_v23 = vld [vmem:[#allocation10 + $0x990] sm:$0xff] }
 0x13c   :  { %1425 = vmatpush.msrb.mxu2 %v1264_v18 }
 0x13d   :  { %v686_v20 = vadd.f32 %v685_v12, %v657_v14  ;;  %1483 = vmatpush.msra.mxu0 %v1137_v24  ;;  %1401 = vmatpush.msrb.mxu1 %v1180_v30  ;;  %v1162_v12 = vld [vmem:[#allocation10 + $0x9d0] sm:$0xff]  ;;  %v1260_v24 = vld [vmem:[#allocation10 + $0xce0] sm:$0xff] }
 0x13e   :  { %v604_v21 = vpop.f32.mrf.mxu0  ;;  %v633_v22 = vpop.f32.mrf.mxu1  ;;  %v1256_v30 = vld [vmem:[#allocation10 + $0xcc0] sm:$0xff]  ;;  %1426 = vmatpush.msrb.mxu2 %v1260_v24 }
 0x13f   :  { %v2722_v25 = vadd.f32 %v1047_v17, %v686_v20  ;;  %1484 = vmatpush.msra.mxu0 %v1133_v31  ;;  %1402 = vmatpush.msrb.mxu1 %v1176_v34  ;;  %v634_v40 = vadd.f32 %v633_v22, %v604_v21  ;;  %v1150_v31 = vld [vmem:[#allocation10 + $0x970] sm:$0xff]  ;;  %v1348_v24 = vld [vmem:[#allocation10 + $0xfa0] sm:$0xff] }
 0x140   :  { %1427 = vmatpush.msrb.mxu2 %v1256_v30  ;;  %v1110_v30 = vld [vmem:[#allocation10 + $0x830] sm:$0xff] }
 0x141   :  { %vm1063_vm9 = vcmp.gt.f32.partialorder %v2722_v25, 0.0  ;;  %v1071_v33 = vmul.f32 0.2, %v2722_v25  ;;  %1485 = vmatpush.msra.mxu0 %v1129_v37  ;;  %1403 = vmatpush.msrb.mxu1 %v1172_v42  ;;  %v1146_v42 = vld [vmem:[#allocation10 + $0x950] sm:$0xff] }
 0x142   :  { %v1087_v50 = vsel %vm1063_vm9, 1.0, %v2418_v61 }
 0x143   :  { %v659_v35 = vpop.f32.mrf.mxu2  ;;  %v688_v36 = vpop.f32.mrf.mxu3  ;;  %v2729_v41 = vsel %vm1063_vm9, %v2722_v25, %v1071_v33  ;;  %1486 = vmatpush.msra.mxu0 %v1125_v45  ;;  %1404 = vmatpush.msrb.mxu1 %v1168_v52  ;;  %v1197_v25 = vld [vmem:[#allocation10 + $0xae8] sm:$0xff]  ;;  %v1248_v52 = vld [vmem:[#allocation10 + $0xc80] sm:$0xff] }
 0x144   :  { %v660_v38 = vadd.f32 %v659_v35, %v631_v32  ;;  %1376 = vmatmul.f32.vlgmr.msrb.gmra.mxu0 %v2729_v41  ;;  %v1193_v32 = vld [vmem:[#allocation10 + $0xac8] sm:$0xff]  ;;  %v1252_v35 = vld [vmem:[#allocation10 + $0xca0] sm:$0xff] }
 0x145   :  { %1487 = vmatpush.msra.mxu0 %v1121_v53  ;;  %1505 = vmatpush.msra.mxu1 %v1229_v55  ;;  %v1189_v45 = vld [vmem:[#allocation10 + $0xaa8] sm:$0xff] }
 0x146   :  { %v689_v46 = vadd.f32 %v688_v36, %v660_v38  ;;  %v607_v47 = vpop.f32.mrf.mxu0  ;;  %v636_v51 = vpop.f32.mrf.mxu1  ;;  %1428 = vmatpush.msrb.mxu2 %v1252_v35  ;;  %v1185_v53 = vld [vmem:[#allocation10 + $0xa88] sm:$0xff] }
 0x147   :  { %1488 = vmatpush.msra.mxu0 %v1117_v16  ;;  %1506 = vmatpush.msra.mxu1 %v1225_v39  ;;  %v637_v48 = vadd.f32 %v636_v51, %v607_v47  ;;  %v1048_v47 = vperm.slane %v2719_v7, 1  ;;  %v1142_v51 = vld [vmem:[#allocation10 + $0x930] sm:$0xff]  ;;  %v1244_v16 = vld [vmem:[#allocation10 + $0xc60] sm:$0xff]  ;;  %v1181_v39 = vld [vmem:[#allocation10 + $0xa68] sm:$0xff] }
 0x148   :  { %v2732_v56 = vadd.f32 %v1047_v17, %v689_v46  ;;  %v1158_v17 = vld [vmem:[#allocation10 + $0x9b0] sm:$0xff]  ;;  %1429 = vmatpush.msrb.mxu2 %v1248_v52  ;;  %v1281_v35 = vld [vmem:[#allocation10 + $0xd88] sm:$0xff] }
 0x149   :  { %1489 = vmatpush.msra.mxu0 %v1113_v4  ;;  %1507 = vmatpush.msra.mxu1 %v1221_v5 }
 0x14a   :  { %vm1067_vm10 = vcmp.gt.f32.partialorder %v2732_v56, 0.0  ;;  %v1075_v43 = vmul.f32 0.2, %v2732_v56  ;;  %1430 = vmatpush.msrb.mxu2 %v1244_v16  ;;  %v1336_v16 = vld [vmem:[#allocation10 + $0xf40] sm:$0xff] }
 0x14b   :  { %v662_v2 = vpop.f32.mrf.mxu2  ;;  %v691_v3 = vpop.f32.mrf.mxu3  ;;  %1490 = vmatpush.msra.mxu0 %v1109_v59  ;;  %1508 = vmatpush.msra.mxu1 %v1217_v27  ;;  %v1091_v34 = vsel %vm1067_vm10, 1.0, %v2418_v61  ;;  %v1130_v59 = vld [vmem:[#allocation10 + $0x8d0] sm:$0xff] }
 0x14c   :  { %v663_v57 = vadd.f32 %v662_v2, %v634_v40  ;;  %v2739_v58 = vsel %vm1067_vm10, %v2732_v56, %v1075_v43  ;;  %v1240_v43 = vld [vmem:[#allocation10 + $0xc40] sm:$0xff]  ;;  %v1177_v2 = vld [vmem:[#allocation10 + $0xa48] sm:$0xff] }
 0x14d   :  { %1379 = vmatmul.f32.gmra.mxu0 %v2739_v58  ;;  %1509 = vmatpush.msra.mxu1 %v1213_v49 }
 0x14e   :  { %v714_v28 = vpop.f32.mrf.mxu0  ;;  %v743_v29 = vpop.f32.mrf.mxu1  ;;  %v692_v60 = vadd.f32 %v691_v3, %v663_v57  ;;  %1491 = vmatpush.msra.mxu0 %v1105_v62  ;;  %1431 = vmatpush.msrb.mxu2 %v1240_v43  ;;  %v1232_v62 = vld [vmem:[#allocation10 + $0xc00] sm:$0xff]  ;;  %v1273_v43 = vld [vmem:[#allocation10 + $0xd48] sm:$0xff] }
 0x14f   :  { %1510 = vmatpush.msra.mxu1 %v1209_v6  ;;  %v744_v33 = vadd.f32 %v743_v29, %v714_v28  ;;  %v1173_v29 = vld [vmem:[#allocation10 + $0xa28] sm:$0xff]  ;;  %v1122_v6 = vld [vmem:[#allocation10 + $0x890] sm:$0xff] }
 0x150   :  { %v2745_v9 = vmul.f32 %v1087_v50, %v692_v60  ;;  %1592 = vmatpush.msrb.mxu0 %v1166_v0  ;;  %v1126_v60 = vld [vmem:[#allocation10 + $0x8b0] sm:$0xff]  ;;  %1432 = vmatpush.msrb.mxu2 %v1236_v26  ;;  %v1293_v50 = vld [vmem:[#allocation10 + $0xde8] sm:$0xff]  ;;  %v1155_v26 = vld [vmem:[#allocation10 + $0x998] sm:$0xff] }
 0x151   :  { %1511 = vmatpush.msra.mxu1 %v1205_v13  ;;  %v1289_v13 = vld [vmem:[#allocation10 + $0xdc8] sm:$0xff] }
 0x152   :  { %1593 = vmatpush.msrb.mxu0 %v1162_v12  ;;  %1433 = vmatpush.msrb.mxu2 %v1232_v62  ;;  %v1118_v12 = vld [vmem:[#allocation10 + $0x870] sm:$0xff]  ;;  %v1151_v62 = vld [vmem:[#allocation10 + $0x978] sm:$0xff] }
 0x153   :  { %v665_v10 = vpop.f32.mrf.mxu2  ;;  %v694_v11 = vpop.f32.mrf.mxu3  ;;  %1512 = vmatpush.msra.mxu1 %v1201_v19 }
 0x154   :  { %v666_v14 = vadd.f32 %v665_v10, %v637_v48  ;;  %1594 = vmatpush.msrb.mxu0 %v1158_v17  ;;  %v1356_v48 = vld [vmem:[#allocation10 + $0xfe0] sm:$0xff]  ;;  %v1230_v10 = vld [vmem:[#allocation10 + $0xbf0] sm:$0xff]  ;;  %1534 = vmatpush.msra.mxu2 %v1293_v50  ;;  %v1147_v50 = vld [vmem:[#allocation10 + $0x958] sm:$0xff] }
 0x155   :  { %1382 = vmatmul.f32.gmra.mxu0 %v2745_v9  ;;  %1513 = vmatpush.msra.mxu1 %v1197_v25  ;;  %v1285_v25 = vld [vmem:[#allocation10 + $0xda8] sm:$0xff] }
 0x156   :  { %v717_v20 = vpop.f32.mrf.mxu0  ;;  %v746_v21 = vpop.f32.mrf.mxu1  ;;  %v695_v22 = vadd.f32 %v694_v11, %v666_v14  ;;  %1595 = vmatpush.msrb.mxu0 %v1154_v23  ;;  %v1352_v11 = vld [vmem:[#allocation10 + $0xfc0] sm:$0xff]  ;;  %1447 = vmatpush.msrb.mxu3 %v1356_v48 }
 0x157   :  { %1514 = vmatpush.msra.mxu1 %v1193_v32  ;;  %v747_v3 = vadd.f32 %v746_v21, %v717_v20  ;;  %v1114_v20 = vld [vmem:[#allocation10 + $0x850] sm:$0xff]  ;;  %1535 = vmatpush.msra.mxu2 %v1289_v13 }
 0x158   :  { %v2751_v36 = vmul.f32 %v1091_v34, %v695_v22  ;;  %1596 = vmatpush.msrb.mxu0 %v1150_v31  ;;  %1448 = vmatpush.msrb.mxu3 %v1352_v11  ;;  %v1226_v21 = vld [vmem:[#allocation10 + $0xbd0] sm:$0xff]  ;;  %v1344_v34 = vld [vmem:[#allocation10 + $0xf80] sm:$0xff] }
 0x159   :  { %1515 = vmatpush.msra.mxu1 %v1189_v45  ;;  %v1222_v31 = vld [vmem:[#allocation10 + $0xbb0] sm:$0xff]  ;;  %1536 = vmatpush.msra.mxu2 %v1285_v25  ;;  %v1167_v45 = vld [vmem:[#allocation10 + $0x9f8] sm:$0xff]  ;;  %v1253_v25 = vld [vmem:[#allocation10 + $0xca8] sm:$0xff] }
 0x15a   :  { %1597 = vmatpush.msrb.mxu0 %v1146_v42  ;;  %1449 = vmatpush.msrb.mxu3 %v1348_v24  ;;  %v1218_v42 = vld [vmem:[#allocation10 + $0xb90] sm:$0xff]  ;;  %v1139_v24 = vld [vmem:[#allocation10 + $0x918] sm:$0xff] }
 0x15b   :  { %v772_v37 = vpop.f32.mrf.mxu2  ;;  %v801_v38 = vpop.f32.mrf.mxu3  ;;  %1516 = vmatpush.msra.mxu1 %v1185_v53  ;;  %1537 = vmatpush.msra.mxu2 %v1281_v35  ;;  %v1198_v13 = vld [vmem:[#allocation10 + $0xaf0] sm:$0xff] }
 0x15c   :  { %v773_v46 = vadd.f32 %v772_v37, %v744_v33  ;;  %1598 = vmatpush.msrb.mxu0 %v1142_v51  ;;  %1450 = vmatpush.msrb.mxu3 %v1344_v34  ;;  %v1214_v51 = vld [vmem:[#allocation10 + $0xb70] sm:$0xff]  ;;  %v1249_v34 = vld [vmem:[#allocation10 + $0xc88] sm:$0xff] }
 0x15d   :  { %1385 = vmatmul.f32.gmra.mxu0 %v2751_v36  ;;  %1517 = vmatpush.msra.mxu1 %v1181_v39 }
 0x15e   :  { %v802_v54 = vadd.f32 %v801_v38, %v773_v46  ;;  %v720_v55 = vpop.f32.mrf.mxu0  ;;  %v749_v56 = vpop.f32.mrf.mxu1  ;;  %1599 = vmatpush.msrb.mxu0 %v1138_v15  ;;  %v1106_v38 = vld [vmem:[#allocation10 + $0x810] sm:$0xff]  ;;  %v1340_v46 = vld [vmem:[#allocation10 + $0xf60] sm:$0xff]  ;;  %v1163_v15 = vld [vmem:[#allocation10 + $0x9d8] sm:$0xff] }
 0x15f   :  { %1518 = vmatpush.msra.mxu1 %v1177_v2  ;;  %v750_v14 = vadd.f32 %v749_v56, %v720_v55  ;;  %1451 = vmatpush.msrb.mxu3 %v1340_v46  ;;  %v1332_v2 = vld [vmem:[#allocation10 + $0xf20] sm:$0xff] }
 0x160   :  { %v2755_v40 = vadd.f32 %v1048_v47, %v802_v54  ;;  %1600 = vmatpush.msrb.mxu0 %v1134_v44  ;;  %v1210_v44 = vld [vmem:[#allocation10 + $0xb50] sm:$0xff] }
 0x161   :  { %1519 = vmatpush.msra.mxu1 %v1173_v29  ;;  %1452 = vmatpush.msrb.mxu3 %v1336_v16  ;;  %v1265_v29 = vld [vmem:[#allocation10 + $0xd08] sm:$0xff] }
 0x162   :  { %vm1064_vm11 = vcmp.gt.f32.partialorder %v2755_v40, 0.0  ;;  %v1072_v4 = vmul.f32 0.2, %v2755_v40  ;;  %1601 = vmatpush.msrb.mxu0 %v1130_v59 }
 0x163   :  { %v775_v5 = vpop.f32.mrf.mxu2  ;;  %v804_v57 = vpop.f32.mrf.mxu3  ;;  %1520 = vmatpush.msra.mxu1 %v1169_v1  ;;  %v1088_v53 = vsel %vm1064_vm11, 1.0, %v2418_v61  ;;  %1453 = vmatpush.msrb.mxu3 %v1332_v2 }
 0x164   :  { %v776_v27 = vadd.f32 %v775_v5, %v747_v3  ;;  %v2762_v28 = vsel %vm1064_vm11, %v2755_v40, %v1072_v4  ;;  %1602 = vmatpush.msrb.mxu0 %v1126_v60  ;;  %v1159_v40 = vld [vmem:[#allocation10 + $0x9b8] sm:$0xff]  ;;  %v1269_v5 = vld [vmem:[#allocation10 + $0xd28] sm:$0xff]  ;;  %v1202_v60 = vld [vmem:[#allocation10 + $0xb10] sm:$0xff] }
 0x165   :  { %1405 = vmatmul.f32.vlgmr.msrb.gmra.mxu1 %v2762_v28  ;;  %1492 = vmatmul.f32.vlgmr.msra.gmra.mxu0 %v2729_v41 }
 0x166   :  { %v805_v63 = vadd.f32 %v804_v57, %v776_v27  ;;  %v723_v49 = vpop.f32.mrf.mxu0  ;;  %v752_v0 = vpop.f32.mrf.mxu1  ;;  %1603 = vmatpush.msrb.mxu0 %v1122_v6  ;;  %1621 = vmatpush.msrb.mxu1 %v1230_v10  ;;  %v1206_v57 = vld [vmem:[#allocation10 + $0xb30] sm:$0xff]  ;;  %v1328_v27 = vld [vmem:[#allocation10 + $0xf00] sm:$0xff]  ;;  %v1261_v10 = vld [vmem:[#allocation10 + $0xce8] sm:$0xff] }
 0x167   :  { %v753_v52 = vadd.f32 %v752_v0, %v723_v49  ;;  %1454 = vmatpush.msrb.mxu3 %v1328_v27 }
 0x168   :  { %v2766_v8 = vadd.f32 %v1048_v47, %v805_v63  ;;  %1604 = vmatpush.msrb.mxu0 %v1118_v12  ;;  %1622 = vmatpush.msrb.mxu1 %v1226_v21  ;;  %v1277_v47 = vld [vmem:[#allocation10 + $0xd68] sm:$0xff]  ;;  %v1324_v63 = vld [vmem:[#allocation10 + $0xee0] sm:$0xff]  ;;  %v1049_v12 = vperm.slane %v2719_v7, 2  ;;  %v1194_v21 = vld [vmem:[#allocation10 + $0xad0] sm:$0xff] }
 0x169   :  { %1538 = vmatpush.msra.mxu2 %v1277_v47  ;;  %1455 = vmatpush.msrb.mxu3 %v1324_v63 }
 0x16a   :  { %vm1068_vm12 = vcmp.gt.f32.partialorder %v2766_v8, 0.0  ;;  %v1076_v17 = vmul.f32 0.2, %v2766_v8  ;;  %1605 = vmatpush.msrb.mxu0 %v1114_v20  ;;  %1623 = vmatpush.msrb.mxu1 %v1222_v31  ;;  %v1190_v31 = vld [vmem:[#allocation10 + $0xab0] sm:$0xff] }
 0x16b   :  { %v778_v18 = vpop.f32.mrf.mxu2  ;;  %v807_v19 = vpop.f32.mrf.mxu3  ;;  %1539 = vmatpush.msra.mxu2 %v1273_v43  ;;  %v1092_v0 = vsel %vm1068_vm12, 1.0, %v2418_v61  ;;  %v1304_v43 = vld [vmem:[#allocation10 + $0xe40] sm:$0xff] }
 0x16c   :  { %v779_v22 = vadd.f32 %v778_v18, %v750_v14  ;;  %v2773_v23 = vsel %vm1068_vm12, %v2766_v8, %v1076_v17  ;;  %1606 = vmatpush.msrb.mxu0 %v1110_v30  ;;  %1624 = vmatpush.msrb.mxu1 %v1218_v42  ;;  %v1320_v14 = vld [vmem:[#allocation10 + $0xec0] sm:$0xff]  ;;  %v1143_v8 = vld [vmem:[#allocation10 + $0x938] sm:$0xff]  ;;  %v1257_v17 = vld [vmem:[#allocation10 + $0xcc8] sm:$0xff] }
 0x16d   :  { %1408 = vmatmul.f32.gmra.mxu1 %v2773_v23  ;;  %1495 = vmatmul.f32.gmra.mxu0 %v2739_v58 }
 0x16e   :  { %v830_v32 = vpop.f32.mrf.mxu0  ;;  %v859_v33 = vpop.f32.mrf.mxu1  ;;  %v808_v37 = vadd.f32 %v807_v19, %v779_v22  ;;  %1607 = vmatpush.msrb.mxu0 %v1106_v38  ;;  %1625 = vmatpush.msrb.mxu1 %v1214_v51  ;;  %v1316_v22 = vld [vmem:[#allocation10 + $0xea0] sm:$0xff]  ;;  %v1131_v51 = vld [vmem:[#allocation10 + $0x8d8] sm:$0xff] }
 0x16f   :  { %1540 = vmatpush.msra.mxu2 %v1269_v5  ;;  %v860_v49 = vadd.f32 %v859_v33, %v830_v32  ;;  %1456 = vmatpush.msrb.mxu3 %v1320_v14  ;;  %v1312_v32 = vld [vmem:[#allocation10 + $0xe80] sm:$0xff]  ;;  %v1135_v33 = vld [vmem:[#allocation10 + $0x8f8] sm:$0xff]  ;;  %v1237_v5 = vld [vmem:[#allocation10 + $0xc28] sm:$0xff] }
 0x170   :  { %v2780_v54 = vmul.f32 %v1088_v53, %v808_v37  ;;  %1708 = vmatpush.msra.mxu0 %v1167_v45  ;;  %1626 = vmatpush.msrb.mxu1 %v1210_v44  ;;  %v1186_v45 = vld [vmem:[#allocation10 + $0xa90] sm:$0xff]  ;;  %v1245_v53 = vld [vmem:[#allocation10 + $0xc68] sm:$0xff] }
 0x171   :  { %1541 = vmatpush.msra.mxu2 %v1265_v29  ;;  %1457 = vmatpush.msrb.mxu3 %v1316_v22  ;;  %v1241_v44 = vld [vmem:[#allocation10 + $0xc48] sm:$0xff] }
 0x172   :  { %1709 = vmatpush.msra.mxu0 %v1163_v15  ;;  %1627 = vmatpush.msrb.mxu1 %v1206_v57  ;;  %v1174_v57 = vld [vmem:[#allocation10 + $0xa30] sm:$0xff] }
 0x173   :  { %v781_v55 = vpop.f32.mrf.mxu2  ;;  %v810_v56 = vpop.f32.mrf.mxu3  ;;  %1542 = vmatpush.msra.mxu2 %v1261_v10  ;;  %1458 = vmatpush.msrb.mxu3 %v1312_v32  ;;  %v1294_v10 = vld [vmem:[#allocation10 + $0xdf0] sm:$0xff] }
 0x174   :  { %v782_v39 = vadd.f32 %v781_v55, %v753_v52  ;;  %1710 = vmatpush.msra.mxu0 %v1159_v40  ;;  %1628 = vmatpush.msrb.mxu1 %v1202_v60  ;;  %v1308_v52 = vld [vmem:[#allocation10 + $0xe60] sm:$0xff]  ;;  %v1182_v55 = vld [vmem:[#allocation10 + $0xa70] sm:$0xff] }
 0x175   :  { %1411 = vmatmul.f32.gmra.mxu1 %v2780_v54  ;;  %1498 = vmatmul.f32.gmra.mxu0 %v2745_v9  ;;  %v1178_v40 = vld [vmem:[#allocation10 + $0xa50] sm:$0xff]  ;;  %v1296_v60 = vld [vmem:[#allocation10 + $0xe00] sm:$0xff] }
 0x176   :  { %v833_v3 = vpop.f32.mrf.mxu0  ;;  %v862_v4 = vpop.f32.mrf.mxu1  ;;  %v811_v59 = vadd.f32 %v810_v56, %v782_v39  ;;  %1711 = vmatpush.msra.mxu0 %v1155_v26  ;;  %1629 = vmatpush.msrb.mxu1 %v1198_v13  ;;  %v1127_v39 = vld [vmem:[#allocation10 + $0x8b8] sm:$0xff]  ;;  %v1353_v13 = vld [vmem:[#allocation10 + $0xfc8] sm:$0xff]  ;;  %v1286_v32 = vld [vmem:[#allocation10 + $0xdb0] sm:$0xff] }
 0x177   :  { %1543 = vmatpush.msra.mxu2 %v1257_v17  ;;  %v863_v35 = vadd.f32 %v862_v4, %v833_v3  ;;  %1459 = vmatpush.msrb.mxu3 %v1308_v52  ;;  %v1123_v3 = vld [vmem:[#allocation10 + $0x898] sm:$0xff]  ;;  %v1300_v4 = vld [vmem:[#allocation10 + $0xe20] sm:$0xff]  ;;  %v1337_v52 = vld [vmem:[#allocation10 + $0xf48] sm:$0xff] }
 0x178   :  { %v2787_v1 = vmul.f32 %v1092_v0, %v811_v59  ;;  %1712 = vmatpush.msra.mxu0 %v1151_v62  ;;  %1630 = vmatpush.msrb.mxu1 %v1194_v21  ;;  %v1233_v0 = vld [vmem:[#allocation10 + $0xc08] sm:$0xff]  ;;  %v1111_v17 = vld [vmem:[#allocation10 + $0x838] sm:$0xff] }
 0x179   :  { %1544 = vmatpush.msra.mxu2 %v1253_v25  ;;  %1460 = vmatpush.msrb.mxu3 %v1304_v43 }
 0x17a   :  { %1713 = vmatpush.msra.mxu0 %v1147_v50  ;;  %1631 = vmatpush.msrb.mxu1 %v1190_v31  ;;  %v1115_v50 = vld [vmem:[#allocation10 + $0x858] sm:$0xff] }
 0x17b   :  { %v888_v6 = vpop.f32.mrf.mxu2  ;;  %v917_v48 = vpop.f32.mrf.mxu3  ;;  %1545 = vmatpush.msra.mxu2 %v1249_v34  ;;  %1461 = vmatpush.msrb.mxu3 %v1300_v4  ;;  %v1107_v34 = vld [vmem:[#allocation10 + $0x818] sm:$0xff]  ;;  %v1050_v4 = vperm.slane %v2719_v7, 3  ;;  %v1325_v7 = vld [vmem:[#allocation10 + $0xee8] sm:$0xff] }
 0x17c   :  { %v889_v11 = vadd.f32 %v888_v6, %v860_v49  ;;  %1714 = vmatpush.msra.mxu0 %v1143_v8  ;;  %1632 = vmatpush.msrb.mxu1 %v1186_v45  ;;  %v1119_v49 = vld [vmem:[#allocation10 + $0x878] sm:$0xff]  ;;  %v1170_v6 = vld [vmem:[#allocation10 + $0xa10] sm:$0xff]  ;;  %v1341_v45 = vld [vmem:[#allocation10 + $0xf68] sm:$0xff] }
 0x17d   :  { %1414 = vmatmul.f32.gmra.mxu1 %v2787_v1  ;;  %1501 = vmatmul.f32.gmra.mxu0 %v2751_v36 }
 0x17e   :  { %v918_v18 = vadd.f32 %v917_v48, %v889_v11  ;;  %v836_v19 = vpop.f32.mrf.mxu0  ;;  %v865_v20 = vpop.f32.mrf.mxu1  ;;  %1715 = vmatpush.msra.mxu0 %v1139_v24  ;;  %1546 = vmatpush.msra.mxu2 %v1245_v53  ;;  %v1357_v48 = vld [vmem:[#allocation10 + $0xfe8] sm:$0xff]  ;;  %v1274_v53 = vld [vmem:[#allocation10 + $0xd50] sm:$0xff] }
 0x17f   :  { %1633 = vmatpush.msrb.mxu1 %v1182_v55  ;;  %v866_v59 = vadd.f32 %v865_v20, %v836_v19  ;;  %1462 = vmatpush.msrb.mxu3 %v1296_v60  ;;  %v1227_v19 = vld [vmem:[#allocation10 + $0xbd8] sm:$0xff]  ;;  %v1349_v20 = vld [vmem:[#allocation10 + $0xfa8] sm:$0xff] }
 0x180   :  { %v2792_v30 = vadd.f32 %v1049_v12, %v918_v18  ;;  %1716 = vmatpush.msra.mxu0 %v1135_v33  ;;  %1547 = vmatpush.msra.mxu2 %v1241_v44  ;;  %v1290_v18 = vld [vmem:[#allocation10 + $0xdd0] sm:$0xff] }
 0x181   :  { %1634 = vmatpush.msrb.mxu1 %v1178_v40  ;;  %1563 = vmatpush.msra.mxu3 %v1357_v48  ;;  %v1211_v40 = vld [vmem:[#allocation10 + $0xb58] sm:$0xff] }
 0x182   :  { %vm1065_vm13 = vcmp.gt.f32.partialorder %v2792_v30, 0.0  ;;  %v1073_v37 = vmul.f32 0.2, %v2792_v30  ;;  %1717 = vmatpush.msra.mxu0 %v1131_v51  ;;  %1548 = vmatpush.msra.mxu2 %v1237_v5  ;;  %v1215_v51 = vld [vmem:[#allocation10 + $0xb78] sm:$0xff]  ;;  %v1333_v5 = vld [vmem:[#allocation10 + $0xf28] sm:$0xff] }
 0x183   :  { %v891_v38 = vpop.f32.mrf.mxu2  ;;  %v920_v42 = vpop.f32.mrf.mxu3  ;;  %1635 = vmatpush.msrb.mxu1 %v1174_v57  ;;  %v1089_v22 = vsel %vm1065_vm13, 1.0, %v2418_v61  ;;  %1564 = vmatpush.msra.mxu3 %v1353_v13  ;;  %v1270_v57 = vld [vmem:[#allocation10 + $0xd30] sm:$0xff] }
 0x184   :  { %v892_v46 = vadd.f32 %v891_v38, %v863_v35  ;;  %v2799_v47 = vsel %vm1065_vm13, %v2792_v30, %v1073_v37  ;;  %1718 = vmatpush.msra.mxu0 %v1127_v39  ;;  %1549 = vmatpush.msra.mxu2 %v1233_v0  ;;  %v1223_v35 = vld [vmem:[#allocation10 + $0xbb8] sm:$0xff]  ;;  %v1345_v30 = vld [vmem:[#allocation10 + $0xf88] sm:$0xff]  ;;  %v1282_v37 = vld [vmem:[#allocation10 + $0xd90] sm:$0xff] }
 0x185   :  { %1434 = vmatmul.f32.vlgmr.msrb.gmra.mxu2 %v2799_v47  ;;  %1521 = vmatmul.f32.vlgmr.msra.gmra.mxu1 %v2762_v28  ;;  %v1219_v38 = vld [vmem:[#allocation10 + $0xb98] sm:$0xff]  ;;  %v1258_v13 = vld [vmem:[#allocation10 + $0xcd0] sm:$0xff] }
 0x186   :  { %v921_v56 = vadd.f32 %v920_v42, %v892_v46  ;;  %1608 = vmatmul.f32.vlgmr.msrb.gmra.mxu0 %v2729_v41  ;;  %v839_v15 = vpop.f32.mrf.mxu0  ;;  %v868_v16 = vpop.f32.mrf.mxu1  ;;  %1636 = vmatpush.msrb.mxu1 %v1170_v6  ;;  %v1278_v46 = vld [vmem:[#allocation10 + $0xd70] sm:$0xff] }
 0x187   :  { %1719 = vmatpush.msra.mxu0 %v1123_v3  ;;  %1650 = vmatpush.msrb.mxu2 %v1294_v10  ;;  %v869_v21 = vadd.f32 %v868_v16, %v839_v15 }
 0x188   :  { %v2804_v2 = vadd.f32 %v1049_v12, %v921_v56  ;;  %v1231_v12 = vld [vmem:[#allocation10 + $0xbf8] sm:$0xff]  ;;  %1565 = vmatpush.msra.mxu3 %v1349_v20  ;;  %v1254_v20 = vld [vmem:[#allocation10 + $0xcb0] sm:$0xff] }
 0x189   :  { %1720 = vmatpush.msra.mxu0 %v1119_v49  ;;  %1737 = vmatpush.msra.mxu1 %v1231_v12  ;;  %v1199_v49 = vld [vmem:[#allocation10 + $0xaf8] sm:$0xff]  ;;  %v1321_v12 = vld [vmem:[#allocation10 + $0xec8] sm:$0xff] }
 0x18a   :  { %vm1069_vm14 = vcmp.gt.f32.partialorder %v2804_v2, 0.0  ;;  %v1077_v26 = vmul.f32 0.2, %v2804_v2  ;;  %1651 = vmatpush.msrb.mxu2 %v1290_v18  ;;  %1566 = vmatpush.msra.mxu3 %v1345_v30 }
 0x18b   :  { %v894_v27 = vpop.f32.mrf.mxu2  ;;  %v923_v29 = vpop.f32.mrf.mxu3  ;;  %1721 = vmatpush.msra.mxu0 %v1115_v50  ;;  %1738 = vmatpush.msra.mxu1 %v1227_v19  ;;  %v1093_v56 = vsel %vm1069_vm14, 1.0, %v2418_v61  ;;  %v1317_v19 = vld [vmem:[#allocation10 + $0xea8] sm:$0xff] }
 0x18c   :  { %v895_v62 = vadd.f32 %v894_v27, %v866_v59  ;;  %v2811_v63 = vsel %vm1069_vm14, %v2804_v2, %v1077_v26  ;;  %1652 = vmatpush.msrb.mxu2 %v1286_v32  ;;  %1567 = vmatpush.msra.mxu3 %v1341_v45  ;;  %v1207_v2 = vld [vmem:[#allocation10 + $0xb38] sm:$0xff]  ;;  %v1329_v26 = vld [vmem:[#allocation10 + $0xf08] sm:$0xff]  ;;  %v1266_v27 = vld [vmem:[#allocation10 + $0xd10] sm:$0xff] }
 0x18d   :  { %1437 = vmatmul.f32.gmra.mxu2 %v2811_v63  ;;  %1524 = vmatmul.f32.gmra.mxu1 %v2773_v23  ;;  %v1187_v32 = vld [vmem:[#allocation10 + $0xa98] sm:$0xff] }
 0x18e   :  { %1611 = vmatmul.f32.gmra.mxu0 %v2739_v58  ;;  %v924_v11 = vadd.f32 %v923_v29, %v895_v62  ;;  %v946_v14 = vpop.f32.mrf.mxu0  ;;  %v975_v8 = vpop.f32.mrf.mxu1  ;;  %1739 = vmatpush.msra.mxu1 %v1223_v35  ;;  %v1203_v29 = vld [vmem:[#allocation10 + $0xb18] sm:$0xff]  ;;  %v1262_v62 = vld [vmem:[#allocation10 + $0xcf0] sm:$0xff] }
 0x18f   :  { %1722 = vmatpush.msra.mxu0 %v1111_v17  ;;  %1653 = vmatpush.msrb.mxu2 %v1282_v37  ;;  %v976_v55 = vadd.f32 %v975_v8, %v946_v14  ;;  %v1195_v17 = vld [vmem:[#allocation10 + $0xad8] sm:$0xff] }
 0x190   :  { %v2819_v24 = vmul.f32 %v1089_v22, %v924_v11  ;;  %1740 = vmatpush.msra.mxu1 %v1219_v38  ;;  %1568 = vmatpush.msra.mxu3 %v1337_v52  ;;  %v1309_v38 = vld [vmem:[#allocation10 + $0xe68] sm:$0xff]  ;;  %v1183_v45 = vld [vmem:[#allocation10 + $0xa78] sm:$0xff] }
 0x191   :  { %1723 = vmatpush.msra.mxu0 %v1107_v34  ;;  %1654 = vmatpush.msrb.mxu2 %v1278_v46  ;;  %v1305_v46 = vld [vmem:[#allocation10 + $0xe48] sm:$0xff] }
 0x192   :  { %1741 = vmatpush.msra.mxu1 %v1215_v51  ;;  %1569 = vmatpush.msra.mxu3 %v1333_v5  ;;  %v1242_v51 = vld [vmem:[#allocation10 + $0xc50] sm:$0xff]  ;;  %v1297_v5 = vld [vmem:[#allocation10 + $0xe08] sm:$0xff] }
 0x193   :  { %v897_v25 = vpop.f32.mrf.mxu2  ;;  %v926_v31 = vpop.f32.mrf.mxu3  ;;  %1655 = vmatpush.msrb.mxu2 %v1274_v53 }
 0x194   :  { %v898_v33 = vadd.f32 %v897_v25, %v869_v21  ;;  %1742 = vmatpush.msra.mxu1 %v1211_v40  ;;  %1570 = vmatpush.msra.mxu3 %v1329_v26  ;;  %v1191_v21 = vld [vmem:[#allocation10 + $0xab8] sm:$0xff]  ;;  %v1313_v25 = vld [vmem:[#allocation10 + $0xe88] sm:$0xff] }
 0x195   :  { %1440 = vmatmul.f32.gmra.mxu2 %v2819_v24  ;;  %1527 = vmatmul.f32.gmra.mxu1 %v2780_v54 }
 0x196   :  { %1614 = vmatmul.f32.gmra.mxu0 %v2745_v9  ;;  %v927_v42 = vadd.f32 %v926_v31, %v898_v33  ;;  %v949_v15 = vpop.f32.mrf.mxu0  ;;  %v978_v16 = vpop.f32.mrf.mxu1  ;;  %1656 = vmatpush.msrb.mxu2 %v1270_v57  ;;  %v1250_v31 = vld [vmem:[#allocation10 + $0xc90] sm:$0xff] }
 0x197   :  { %1743 = vmatpush.msra.mxu1 %v1207_v2  ;;  %v979_v0 = vadd.f32 %v978_v16, %v949_v15  ;;  %1571 = vmatpush.msra.mxu3 %v1325_v7  ;;  %v1301_v15 = vld [vmem:[#allocation10 + $0xe28] sm:$0xff]  ;;  %v1238_v16 = vld [vmem:[#allocation10 + $0xc30] sm:$0xff]  ;;  %v1171_v2 = vld [vmem:[#allocation10 + $0xa18] sm:$0xff] }
 0x198   :  { %v2827_v39 = vmul.f32 %v1093_v56, %v927_v42  ;;  %1657 = vmatpush.msrb.mxu2 %v1266_v27  ;;  %v1246_v42 = vld [vmem:[#allocation10 + $0xc70] sm:$0xff]  ;;  %v1179_v56 = vld [vmem:[#allocation10 + $0xa58] sm:$0xff] }
 0x199   :  { %1744 = vmatpush.msra.mxu1 %v1203_v29  ;;  %1572 = vmatpush.msra.mxu3 %v1321_v12  ;;  %v1234_v57 = vld [vmem:[#allocation10 + $0xc10] sm:$0xff]  ;;  %v1295_v27 = vld [vmem:[#allocation10 + $0xdf8] sm:$0xff] }
 0x19a   :  { %1658 = vmatpush.msrb.mxu2 %v1262_v62  ;;  %v1291_v7 = vld [vmem:[#allocation10 + $0xdd8] sm:$0xff]  ;;  %v1350_v62 = vld [vmem:[#allocation10 + $0xfb0] sm:$0xff] }
 0x19b   :  { %v1004_v43 = vpop.f32.mrf.mxu2  ;;  %v1033_v44 = vpop.f32.mrf.mxu3  ;;  %1745 = vmatpush.msra.mxu1 %v1199_v49  ;;  %1573 = vmatpush.msra.mxu3 %v1317_v19  ;;  %v1338_v12 = vld [vmem:[#allocation10 + $0xf50] sm:$0xff]  ;;  %v1263_v19 = vld [vmem:[#allocation10 + $0xcf8] sm:$0xff] }
 0x19c   :  { %v1005_v3 = vadd.f32 %v1004_v43, %v976_v55  ;;  %1659 = vmatpush.msrb.mxu2 %v1258_v13  ;;  %v1175_v43 = vld [vmem:[#allocation10 + $0xa38] sm:$0xff] }
 0x19d   :  { %1443 = vmatmul.f32.gmra.mxu2 %v2827_v39  ;;  %1530 = vmatmul.f32.gmra.mxu1 %v2787_v1  ;;  %v1275_v13 = vld [vmem:[#allocation10 + $0xd58] sm:$0xff] }
 0x19e   :  { %v1034_v59 = vadd.f32 %v1033_v44, %v1005_v3  ;;  %1617 = vmatmul.f32.gmra.mxu0 %v2751_v36  ;;  %v952_v14 = vpop.f32.mrf.mxu0  ;;  %v981_v8 = vpop.f32.mrf.mxu1  ;;  %1746 = vmatpush.msra.mxu1 %v1195_v17  ;;  %v1267_v17 = vld [vmem:[#allocation10 + $0xd18] sm:$0xff] }
 0x19f   :  { %1660 = vmatpush.msrb.mxu2 %v1254_v20  ;;  %v982_v33 = vadd.f32 %v981_v8, %v952_v14  ;;  %1574 = vmatpush.msra.mxu3 %v1313_v25  ;;  %v1334_v14 = vld [vmem:[#allocation10 + $0xf30] sm:$0xff]  ;;  %v1271_v8 = vld [vmem:[#allocation10 + $0xd38] sm:$0xff] }
 0x1a0   :  { %v2833_v60 = vadd.f32 %v1050_v4, %v1034_v59  ;;  %1747 = vmatpush.msra.mxu1 %v1191_v21  ;;  %v1358_v59 = vld [vmem:[#allocation10 + $0xff0] sm:$0xff]  ;;  %v1259_v21 = vld [vmem:[#allocation10 + $0xcd8] sm:$0xff] }
 0x1a1   :  { %1661 = vmatpush.msrb.mxu2 %v1250_v31  ;;  %1575 = vmatpush.msra.mxu3 %v1309_v38  ;;  %v1322_v20 = vld [vmem:[#allocation10 + $0xed0] sm:$0xff]  ;;  %v1251_v31 = vld [vmem:[#allocation10 + $0xc98] sm:$0xff] }
 0x1a2   :  { %v1074_v6 = vmul.f32 0.2, %v2833_v60  ;;  %vm1066_vm15 = vcmp.gt.f32.partialorder %v2833_v60, 0.0  ;;  %1748 = vmatpush.msra.mxu1 %v1187_v32  ;;  %v1314_v25 = vld [vmem:[#allocation10 + $0xe90] sm:$0xff]  ;;  %v1235_v38 = vld [vmem:[#allocation10 + $0xc18] sm:$0xff] }
 0x1a3   :  { %v1007_v48 = vpop.f32.mrf.mxu2  ;;  %v1036_v50 = vpop.f32.mrf.mxu3  ;;  %1662 = vmatpush.msrb.mxu2 %v1246_v42  ;;  %1576 = vmatpush.msra.mxu3 %v1305_v46  ;;  %v1090_v40 = vsel %vm1066_vm15, 1.0, %v2418_v61  ;;  %v1310_v32 = vld [vmem:[#allocation10 + $0xe70] sm:$0xff]  ;;  %v1359_v42 = vld [vmem:[#allocation10 + $0xff8] sm:$0xff] }
 0x1a4   :  { %v1008_v10 = vadd.f32 %v1007_v48, %v979_v0  ;;  %v2840_v11 = vsel %vm1066_vm15, %v2833_v60, %v1074_v6  ;;  %1749 = vmatpush.msra.mxu1 %v1183_v45  ;;  %v1354_v60 = vld [vmem:[#allocation10 + $0xfd0] sm:$0xff]  ;;  %v1283_v48 = vld [vmem:[#allocation10 + $0xd98] sm:$0xff] }
 0x1a5   :  { %1463 = vmatmul.f32.vlgmr.msrb.gmra.mxu3 %v2840_v11  ;;  %1550 = vmatmul.f32.vlgmr.msra.gmra.mxu2 %v2799_v47  ;;  %v1346_v6 = vld [vmem:[#allocation10 + $0xf90] sm:$0xff]  ;;  %v1355_v45 = vld [vmem:[#allocation10 + $0xfd8] sm:$0xff] }
 0x1a6   :  { %v1037_v18 = vadd.f32 %v1036_v50, %v1008_v10  ;;  %1637 = vmatmul.f32.vlgmr.msrb.gmra.mxu1 %v2762_v28  ;;  %1724 = vmatmul.f32.vlgmr.msra.gmra.mxu0 %v2729_v41  ;;  %v955_v52 = vpop.f32.mrf.mxu0  ;;  %v984_v53 = vpop.f32.mrf.mxu1  ;;  %v1342_v50 = vld [vmem:[#allocation10 + $0xf70] sm:$0xff]  ;;  %v1279_v10 = vld [vmem:[#allocation10 + $0xd78] sm:$0xff] }
 0x1a7   :  { %1663 = vmatpush.msrb.mxu2 %v1242_v51  ;;  %v985_v44 = vadd.f32 %v984_v53, %v955_v52  ;;  %1750 = vmatpush.msra.mxu1 %v1179_v56  ;;  %v1351_v46 = vld [vmem:[#allocation10 + $0xfb8] sm:$0xff] }
 0x1a8   :  { %v2846_v22 = vadd.f32 %v1050_v4, %v1037_v18  ;;  %1577 = vmatpush.msra.mxu3 %v1301_v15  ;;  %v1326_v18 = vld [vmem:[#allocation10 + $0xef0] sm:$0xff]  ;;  %v1343_v51 = vld [vmem:[#allocation10 + $0xf78] sm:$0xff] }
 0x1a9   :  { %1664 = vmatpush.msrb.mxu2 %v1238_v16  ;;  %1751 = vmatpush.msra.mxu1 %v1175_v43  ;;  %v1339_v52 = vld [vmem:[#allocation10 + $0xf58] sm:$0xff] }
 0x1aa   :  { %v1078_v34 = vmul.f32 0.2, %v2846_v22  ;;  %vm1070_vm0 = vcmp.gt.f32.partialorder %v2846_v22, 0.0  ;;  %1578 = vmatpush.msra.mxu3 %v1297_v5  ;;  %v1335_v53 = vld [vmem:[#allocation10 + $0xf38] sm:$0xff]  ;;  %v1895_v5 = vld [vmem:[#allocation13 + $0x60] sm:$0xff] }
 0x1ab   :  { %v1010_v41 = vpop.f32.mrf.mxu2  ;;  %v1039_v30 = vpop.f32.mrf.mxu3  ;;  %1665 = vmatpush.msrb.mxu2 %v1234_v57  ;;  %1752 = vmatpush.msra.mxu1 %v1171_v2  ;;  %v1094_v49 = vsel %vm1070_vm0, 1.0, %v2418_v61  ;;  %v1327_v56 = vld [vmem:[#allocation10 + $0xef8] sm:$0xff]  ;;  %v1894_v57 = vld [vmem:[#allocation13 + $0x58] sm:$0xff] }
 0x1ac   :  { %v1011_v35 = vadd.f32 %v1010_v41, %v982_v33  ;;  %v2853_v37 = vsel %vm1070_vm0, %v2846_v22, %v1078_v34  ;;  %1679 = vmatpush.msrb.mxu3 %v1358_v59  ;;  %v1318_v22 = vld [vmem:[#allocation10 + $0xeb0] sm:$0xff]  ;;  %v1247_v33 = vld [vmem:[#allocation10 + $0xc78] sm:$0xff] }
 0x1ad   :  { %1466 = vmatmul.f32.gmra.mxu3 %v2853_v37  ;;  %1553 = vmatmul.f32.gmra.mxu2 %v2811_v63  ;;  %v1306_v34 = vld [vmem:[#allocation10 + $0xe50] sm:$0xff]  ;;  %v1243_v41 = vld [vmem:[#allocation10 + $0xc58] sm:$0xff] }
 0x1ae   :  { %1640 = vmatmul.f32.gmra.mxu1 %v2773_v23  ;;  %1727 = vmatmul.f32.gmra.mxu0 %v2739_v58  ;;  %v1040_v55 = vadd.f32 %v1039_v30, %v1011_v35  ;;  %v1239_v35 = vld [vmem:[#allocation10 + $0xc38] sm:$0xff]  ;;  %v1298_v30 = vld [vmem:[#allocation10 + $0xe10] sm:$0xff] }
 0x1af   :  { %1766 = vmatpush.msra.mxu2 %v1295_v27  ;;  %1680 = vmatpush.msrb.mxu3 %v1354_v60  ;;  %v1323_v15 = vld [vmem:[#allocation10 + $0xed8] sm:$0xff]  ;;  %v1892_v59 = vld [vmem:[#allocation13 + $0x48] sm:$0xff] }
 0x1b0   :  { %v2862_v58 = vmul.f32 %v1090_v40, %v1040_v55  ;;  %v1331_v55 = vld [vmem:[#allocation10 + $0xf18] sm:$0xff] }
 0x1b1   :  { %1767 = vmatpush.msra.mxu2 %v1291_v7  ;;  %1681 = vmatpush.msrb.mxu3 %v1350_v62  ;;  %v1315_v16 = vld [vmem:[#allocation10 + $0xe98] sm:$0xff]  ;;  %v1887_v7 = vld [vmem:[#allocation13 + $0x20] sm:$0xff] }
 0x1b2   :  { %v1311_v43 = vld [vmem:[#allocation10 + $0xe78] sm:$0xff] }
 0x1b3   :  { %v1013_v3 = vpop.f32.mrf.mxu2  ;;  %v1042_v26 = vpop.f32.mrf.mxu3  ;;  %1682 = vmatpush.msrb.mxu3 %v1346_v6  ;;  %v1897_v40 = vld [vmem:[#allocation13 + $0x70] sm:$0xff]  ;;  %v1884_v6 = vld [vmem:[#allocation13 + $0x8] sm:$0xff] }
 0x1b4   :  { %v1014_v4 = vadd.f32 %v1013_v3, %v985_v44  ;;  %v1898_v44 = vld [vmem:[#allocation13 + $0x78] sm:$0xff]  ;;  %v1303_v3 = vld [vmem:[#allocation10 + $0xe38] sm:$0xff] }
 0x1b5   :  { %1469 = vmatmul.f32.gmra.mxu3 %v2862_v58  ;;  %1556 = vmatmul.f32.gmra.mxu2 %v2819_v24  ;;  %v1893_v2 = vld [vmem:[#allocation13 + $0x50] sm:$0xff] }
 0x1b6   :  { %1643 = vmatmul.f32.gmra.mxu1 %v2780_v54  ;;  %1730 = vmatmul.f32.gmra.mxu0 %v2745_v9  ;;  %v1043_v29 = vadd.f32 %v1042_v26, %v1014_v4  ;;  %v1287_v9 = vld [vmem:[#allocation10 + $0xdb8] sm:$0xff]  ;;  %v1896_v4 = vld [vmem:[#allocation13 + $0x68] sm:$0xff]  ;;  %v1891_v26 = vld [vmem:[#allocation13 + $0x40] sm:$0xff] }
 0x1b7   :  { %1768 = vmatpush.msra.mxu2 %v1287_v9  ;;  %1683 = vmatpush.msrb.mxu3 %v1342_v50  ;;  %v1889_v27 = vld [vmem:[#allocation13 + $0x30] sm:$0xff]  ;;  %v1886_v9 = vld [vmem:[#allocation13 + $0x18] sm:$0xff] }
 0x1b8   :  { %v2871_v0 = vmul.f32 %v1094_v49, %v1043_v29  ;;  %1947 = vmatpush.msrb.mxu0 %v1898_v44  ;;  %v1888_v29 = vld [vmem:[#allocation13 + $0x28] sm:$0xff]  ;;  %v1930_v44 = vld [vmem:[#allocation13 + $0x178] sm:$0xff] }
 0x1b9   :  { %1769 = vmatpush.msra.mxu2 %v1283_v48  ;;  %1684 = vmatpush.msrb.mxu3 %v1338_v12  ;;  %v1883_v48 = vld [vmem:[#allocation13] sm:$0xff] }
 0x1ba   :  { %1948 = vmatpush.msrb.mxu0 %v1897_v40  ;;  %v1929_v40 = vld [vmem:[#allocation13 + $0x170] sm:$0xff] }
 0x1bb   :  { %1770 = vmatpush.msra.mxu2 %v1279_v10  ;;  %1685 = vmatpush.msrb.mxu3 %v1334_v14  ;;  %v1912_v14 = vld [vmem:[#allocation13 + $0xe8] sm:$0xff] }
 0x1bc   :  { %1949 = vmatpush.msrb.mxu0 %v1896_v4 }
 0x1bd   :  { %1472 = vmatmul.f32.gmra.mxu3 %v2871_v0  ;;  %1559 = vmatmul.f32.gmra.mxu2 %v2827_v39 }
 0x1be   :  { %1646 = vmatmul.f32.gmra.mxu1 %v2787_v1  ;;  %1733 = vmatmul.f32.gmra.mxu0 %v2751_v36  ;;  %v1330_v36 = vld [vmem:[#allocation10 + $0xf10] sm:$0xff] }
 0x1bf   :  { %1771 = vmatpush.msra.mxu2 %v1275_v13  ;;  %1686 = vmatpush.msrb.mxu3 %v1330_v36  ;;  %v1913_v13 = vld [vmem:[#allocation13 + $0xf0] sm:$0xff] }
 0x1c0   :  { %1950 = vmatpush.msrb.mxu0 %v1895_v5 }
 0x1c1   :  { %1772 = vmatpush.msra.mxu2 %v1271_v8  ;;  %1687 = vmatpush.msrb.mxu3 %v1326_v18  ;;  %v1377_v62 = vpop.f32.mrf.mxu0  ;;  %v1911_v8 = vld [vmem:[#allocation13 + $0xe0] sm:$0xff] }
 0x1c2   :  { %1951 = vmatpush.msrb.mxu0 %v1894_v57 }
 0x1c3   :  { %1773 = vmatpush.msra.mxu2 %v1267_v17  ;;  %1688 = vmatpush.msrb.mxu3 %v1322_v20  ;;  %v1908_v20 = vld [vmem:[#allocation13 + $0xc8] sm:$0xff] }
 0x1c4   :  { %1952 = vmatpush.msrb.mxu0 %v1893_v2 }
 0x1c5   :  { %1579 = vmatmul.f32.vlgmr.msra.gmra.mxu3 %v2840_v11  ;;  %1666 = vmatmul.f32.vlgmr.msrb.gmra.mxu2 %v2799_v47 }
 0x1c6   :  { %1753 = vmatmul.f32.vlgmr.msra.gmra.mxu1 %v2762_v28  ;;  %1774 = vmatpush.msra.mxu2 %v1263_v19  ;;  %v1255_v28 = vld [vmem:[#allocation10 + $0xcb8] sm:$0xff] }
 0x1c7   :  { %1689 = vmatpush.msrb.mxu3 %v1318_v22  ;;  %1953 = vmatpush.msrb.mxu0 %v1892_v59  ;;  %v1909_v19 = vld [vmem:[#allocation13 + $0xd0] sm:$0xff]  ;;  %v1906_v22 = vld [vmem:[#allocation13 + $0xb8] sm:$0xff] }
 0x1c8   :  { %1775 = vmatpush.msra.mxu2 %v1259_v21  ;;  %v1907_v21 = vld [vmem:[#allocation13 + $0xc0] sm:$0xff] }
 0x1c9   :  { %1690 = vmatpush.msrb.mxu3 %v1314_v25  ;;  %1954 = vmatpush.msrb.mxu0 %v1891_v26  ;;  %v1905_v25 = vld [vmem:[#allocation13 + $0xb0] sm:$0xff] }
 0x1ca   :  { %1776 = vmatpush.msra.mxu2 %v1255_v28  ;;  %v1380_v10 = vpop.f32.mrf.mxu0 }
 0x1cb   :  { %1691 = vmatpush.msrb.mxu3 %v1310_v32 }
 0x1cc   :  { %1777 = vmatpush.msra.mxu2 %v1251_v31  ;;  %v1904_v31 = vld [vmem:[#allocation13 + $0xa8] sm:$0xff] }
 0x1cd   :  { %1582 = vmatmul.f32.gmra.mxu3 %v2853_v37  ;;  %1669 = vmatmul.f32.gmra.mxu2 %v2811_v63 }
 0x1ce   :  { %1756 = vmatmul.f32.gmra.mxu1 %v2773_v23  ;;  %1778 = vmatpush.msra.mxu2 %v1247_v33  ;;  %v1302_v23 = vld [vmem:[#allocation10 + $0xe30] sm:$0xff] }
 0x1cf   :  { %1692 = vmatpush.msrb.mxu3 %v1306_v34 }
 0x1d0   :  { %1779 = vmatpush.msra.mxu2 %v1243_v41  ;;  %v1903_v41 = vld [vmem:[#allocation13 + $0xa0] sm:$0xff] }
 0x1d1   :  { %1693 = vmatpush.msrb.mxu3 %v1302_v23 }
 0x1d2   :  { %1780 = vmatpush.msra.mxu2 %v1239_v35  ;;  %v1383_v17 = vpop.f32.mrf.mxu0 }
 0x1d3   :  { %1694 = vmatpush.msrb.mxu3 %v1298_v30 }
 0x1d4   :  { %1781 = vmatpush.msra.mxu2 %v1235_v38  ;;  %v1902_v38 = vld [vmem:[#allocation13 + $0x98] sm:$0xff] }
 0x1d5   :  { %1585 = vmatmul.f32.gmra.mxu3 %v2862_v58  ;;  %1672 = vmatmul.f32.gmra.mxu2 %v2819_v24 }
 0x1d6   :  { %1759 = vmatmul.f32.gmra.mxu1 %v2780_v54  ;;  %1795 = vmatpush.msra.mxu3 %v1359_v42  ;;  %v1347_v54 = vld [vmem:[#allocation10 + $0xf98] sm:$0xff] }
 0x1d7   :  { %2005 = vmatpush.msrb.mxu2 %v1930_v44 }
 0x1d8   :  { %1796 = vmatpush.msra.mxu3 %v1355_v45  ;;  %v1901_v45 = vld [vmem:[#allocation13 + $0x90] sm:$0xff] }
 0x1d9   :  { %2006 = vmatpush.msrb.mxu2 %v1929_v40 }
 0x1da   :  { %1797 = vmatpush.msra.mxu3 %v1351_v46  ;;  %v1386_v32 = vpop.f32.mrf.mxu0 }
 0x1dc   :  { %1798 = vmatpush.msra.mxu3 %v1347_v54 }
 0x1dd   :  { %1588 = vmatmul.f32.gmra.mxu3 %v2871_v0  ;;  %1675 = vmatmul.f32.gmra.mxu2 %v2827_v39 }
 0x1de   :  { %1762 = vmatmul.f32.gmra.mxu1 %v2787_v1  ;;  %1799 = vmatpush.msra.mxu3 %v1343_v51  ;;  %v1319_v1 = vld [vmem:[#allocation10 + $0xeb8] sm:$0xff] }
 0x1e0   :  { %1800 = vmatpush.msra.mxu3 %v1339_v52  ;;  %v1900_v52 = vld [vmem:[#allocation13 + $0x88] sm:$0xff] }
 0x1e2   :  { %1801 = vmatpush.msra.mxu3 %v1335_v53  ;;  %v1406_v60 = vpop.f32.mrf.mxu1  ;;  %v1899_v53 = vld [vmem:[#allocation13 + $0x80] sm:$0xff] }
 0x1e3   :  { %v1407_v33 = vadd.f32 %v1406_v60, %v1377_v62  ;;  %v1926_v60 = vld [vmem:[#allocation13 + $0x158] sm:$0xff]  ;;  %v1924_v62 = vld [vmem:[#allocation13 + $0x148] sm:$0xff] }
 0x1e4   :  { %1802 = vmatpush.msra.mxu3 %v1331_v55  ;;  %v1493_v55 = vpop.f32.mrf.mxu0 }
 0x1e5   :  { %1695 = vmatmul.f32.vlgmr.msrb.gmra.mxu3 %v2840_v11  ;;  %1782 = vmatmul.f32.vlgmr.msra.gmra.mxu2 %v2799_v47  ;;  %v1307_v47 = vld [vmem:[#allocation10 + $0xe58] sm:$0xff] }
 0x1e6   :  { %1803 = vmatpush.msra.mxu3 %v1327_v56 }
 0x1e8   :  { %1804 = vmatpush.msra.mxu3 %v1323_v15 }
 0x1ea   :  { %1805 = vmatpush.msra.mxu3 %v1319_v1  ;;  %v1409_v50 = vpop.f32.mrf.mxu1 }
 0x1eb   :  { %v1410_v46 = vadd.f32 %v1409_v50, %v1380_v10 }
 0x1ec   :  { %1806 = vmatpush.msra.mxu3 %v1315_v16 }
 0x1ed   :  { %1698 = vmatmul.f32.gmra.mxu3 %v2853_v37  ;;  %1785 = vmatmul.f32.gmra.mxu2 %v2811_v63  ;;  %v1299_v63 = vld [vmem:[#allocation10 + $0xe18] sm:$0xff] }
 0x1ee   :  { %1807 = vmatpush.msra.mxu3 %v1311_v43 }
 0x1f0   :  { %1808 = vmatpush.msra.mxu3 %v1307_v47 }
 0x1f2   :  { %1809 = vmatpush.msra.mxu3 %v1303_v3  ;;  %v1412_v36 = vpop.f32.mrf.mxu1  ;;  %v1928_v3 = vld [vmem:[#allocation13 + $0x168] sm:$0xff] }
 0x1f3   :  { %v1413_v5 = vadd.f32 %v1412_v36, %v1383_v17  ;;  %2007 = vmatpush.msrb.mxu2 %v1928_v3  ;;  %v1920_v36 = vld [vmem:[#allocation13 + $0x128] sm:$0xff] }
 0x1f4   :  { %1810 = vmatpush.msra.mxu3 %v1299_v63  ;;  %v1927_v63 = vld [vmem:[#allocation13 + $0x160] sm:$0xff] }
 0x1f5   :  { %1701 = vmatmul.f32.gmra.mxu3 %v2862_v58  ;;  %1788 = vmatmul.f32.gmra.mxu2 %v2819_v24  ;;  %v1890_v24 = vld [vmem:[#allocation13 + $0x38] sm:$0xff] }
 0x1f6   :  { %1955 = vmatpush.msrb.mxu0 %v1890_v24  ;;  %v1496_v24 = vpop.f32.mrf.mxu0  ;;  %2008 = vmatpush.msrb.mxu2 %v1927_v63  ;;  %v1940_v63 = vld [vmem:[#allocation13 + $0x1c8] sm:$0xff] }
 0x1f8   :  { %1956 = vmatpush.msrb.mxu0 %v1889_v27  ;;  %2009 = vmatpush.msrb.mxu2 %v1926_v60 }
 0x1fa   :  { %1957 = vmatpush.msrb.mxu0 %v1888_v29  ;;  %v1415_v28 = vpop.f32.mrf.mxu1 }
 0x1fc   :  { %1958 = vmatpush.msrb.mxu0 %v1887_v7  ;;  %v1925_v7 = vld [vmem:[#allocation13 + $0x150] sm:$0xff] }
 0x1fd   :  { %1704 = vmatmul.f32.gmra.mxu3 %v2871_v0  ;;  %1791 = vmatmul.f32.gmra.mxu2 %v2827_v39  ;;  %v1885_v39 = vld [vmem:[#allocation13 + $0x10] sm:$0xff] }
 0x1fe   :  { %1959 = vmatpush.msrb.mxu0 %v1886_v9  ;;  %2010 = vmatpush.msrb.mxu2 %v1925_v7  ;;  %v1416_v9 = vadd.f32 %v1415_v28, %v1386_v32 }
 0x200   :  { %1960 = vmatpush.msrb.mxu0 %v1885_v39  ;;  %2011 = vmatpush.msrb.mxu2 %v1924_v62 }
 0x202   :  { %1961 = vmatpush.msrb.mxu0 %v1884_v6  ;;  %v1522_v54 = vpop.f32.mrf.mxu1  ;;  %v1923_v6 = vld [vmem:[#allocation13 + $0x140] sm:$0xff] }
 0x203   :  { %2012 = vmatpush.msrb.mxu2 %v1923_v6 }
 0x204   :  { %1962 = vmatpush.msrb.mxu0 %v1883_v48 }
 0x205   :  { %1811 = vmatmul.f32.vlgmr.msra.gmra.mxu3 %v2840_v11  ;;  %v1914_v11 = vld [vmem:[#allocation13 + $0xf8] sm:$0xff] }
 0x206   :  { %1976 = vmatpush.msrb.mxu1 %v1914_v11  ;;  %v1922_v11 = vld [vmem:[#allocation13 + $0x138] sm:$0xff] }
 0x207   :  { %2013 = vmatpush.msrb.mxu2 %v1922_v11 }
 0x208   :  { %v1435_v49 = vpop.f32.mrf.mxu2  ;;  %1977 = vmatpush.msrb.mxu1 %v1913_v13  ;;  %v1499_v13 = vpop.f32.mrf.mxu0 }
 0x209   :  { %v1436_v23 = vadd.f32 %v1435_v49, %v1407_v33  ;;  %v1917_v33 = vld [vmem:[#allocation13 + $0x110] sm:$0xff] }
 0x20a   :  { %1978 = vmatpush.msrb.mxu1 %v1912_v14  ;;  %v1525_v57 = vpop.f32.mrf.mxu1 }
 0x20c   :  { %1979 = vmatpush.msrb.mxu1 %v1911_v8  ;;  %v1921_v8 = vld [vmem:[#allocation13 + $0x130] sm:$0xff] }
 0x20d   :  { %1814 = vmatmul.f32.gmra.mxu3 %v2853_v37  ;;  %v1910_v37 = vld [vmem:[#allocation13 + $0xd8] sm:$0xff]  ;;  %2014 = vmatpush.msrb.mxu2 %v1921_v8 }
 0x20e   :  { %1980 = vmatpush.msrb.mxu1 %v1910_v37  ;;  %v1523_v37 = vadd.f32 %v1522_v54, %v1493_v55  ;;  %v1946_v54 = vld [vmem:[#allocation13 + $0x1f8] sm:$0xff] }
 0x20f   :  { %2015 = vmatpush.msrb.mxu2 %v1920_v36  ;;  %2034 = vmatpush.msrb.mxu3 %v1946_v54  ;;  %v1934_v36 = vld [vmem:[#allocation13 + $0x198] sm:$0xff] }
 0x210   :  { %v1438_v12 = vpop.f32.mrf.mxu2  ;;  %1981 = vmatpush.msrb.mxu1 %v1909_v19  ;;  %v1919_v19 = vld [vmem:[#allocation13 + $0x120] sm:$0xff] }
 0x211   :  { %v1439_v56 = vadd.f32 %v1438_v12, %v1410_v46  ;;  %2016 = vmatpush.msrb.mxu2 %v1919_v19  ;;  %v1933_v19 = vld [vmem:[#allocation13 + $0x190] sm:$0xff] }
 0x212   :  { %1982 = vmatpush.msrb.mxu1 %v1908_v20  ;;  %v1528_v10 = vpop.f32.mrf.mxu1 }
 0x214   :  { %1983 = vmatpush.msrb.mxu1 %v1907_v21 }
 0x215   :  { %1817 = vmatmul.f32.gmra.mxu3 %v2862_v58  ;;  %v2901_v58 = vld [vmem:[#allocation11 + $0x4] sm:$0xf] }
 0x216   :  { %1984 = vmatpush.msrb.mxu1 %v1906_v22  ;;  %v1827_v35 = vperm.slane %v2901_v58, 0  ;;  %v1828_v21 = vperm.slane %v2901_v58, 1  ;;  %v1829_v11 = vperm.slane %v2901_v58, 2 }
 0x218   :  { %v1441_v18 = vpop.f32.mrf.mxu2  ;;  %1985 = vmatpush.msrb.mxu1 %v1905_v25  ;;  %v1918_v25 = vld [vmem:[#allocation13 + $0x118] sm:$0xff] }
 0x219   :  { %v1442_v59 = vadd.f32 %v1441_v18, %v1413_v5  ;;  %2017 = vmatpush.msrb.mxu2 %v1918_v25  ;;  %v1941_v5 = vld [vmem:[#allocation13 + $0x1d0] sm:$0xff] }
 0x21a   :  { %1986 = vmatpush.msrb.mxu1 %v1904_v31  ;;  %v1531_v31 = vpop.f32.mrf.mxu1 }
 0x21b   :  { %2018 = vmatpush.msrb.mxu2 %v1917_v33 }
 0x21c   :  { %1987 = vmatpush.msrb.mxu1 %v1903_v41  ;;  %v1526_v41 = vadd.f32 %v1525_v57, %v1496_v24 }
 0x21d   :  { %1820 = vmatmul.f32.gmra.mxu3 %v2871_v0 }
 0x21e   :  { %1988 = vmatpush.msrb.mxu1 %v1902_v38 }
 0x220   :  { %v1444_v34 = vpop.f32.mrf.mxu2  ;;  %1989 = vmatpush.msrb.mxu1 %v1901_v45 }
 0x221   :  { %v1445_v48 = vadd.f32 %v1444_v34, %v1416_v9  ;;  %v1502_v34 = vpop.f32.mrf.mxu0  ;;  %v1937_v9 = vld [vmem:[#allocation13 + $0x1b0] sm:$0xff] }
 0x222   :  { %1990 = vmatpush.msrb.mxu1 %v1900_v52  ;;  %v1945_v52 = vld [vmem:[#allocation13 + $0x1f0] sm:$0xff] }
 0x223   :  { %v1638_v55 = vpop.f32.mrf.mxu1  ;;  %2035 = vmatpush.msrb.mxu3 %v1945_v52 }
 0x224   :  { %1991 = vmatpush.msrb.mxu1 %v1899_v53  ;;  %v1944_v53 = vld [vmem:[#allocation13 + $0x1e8] sm:$0xff] }
 0x225   :  { %2036 = vmatpush.msrb.mxu3 %v1944_v53 }
 0x228   :  { %v1464_v0 = vpop.f32.mrf.mxu3  ;;  %v1551_v15 = vpop.f32.mrf.mxu2 }
 0x229   :  { %v1465_v30 = vadd.f32 %v1464_v0, %v1436_v23  ;;  %v1552_v20 = vadd.f32 %v1551_v15, %v1523_v37  ;;  %v1916_v0 = vld [vmem:[#allocation13 + $0x108] sm:$0xff]  ;;  %v1529_v15 = vadd.f32 %v1528_v10, %v1499_v13  ;;  %v1935_v10 = vld [vmem:[#allocation13 + $0x1a0] sm:$0xff] }
 0x22a   :  { %2019 = vmatpush.msrb.mxu2 %v1916_v0 }
 0x22b   :  { %v1835_v42 = vadd.f32 %v1827_v35, %v1465_v30  ;;  %v1915_v30 = vld [vmem:[#allocation13 + $0x100] sm:$0xff]  ;;  %v1641_v24 = vpop.f32.mrf.mxu1 }
 0x22c   :  { %2020 = vmatpush.msrb.mxu2 %v1915_v30 }
 0x22d   :  { %vm1843_vm1 = vcmp.gt.f32.partialorder %v1835_v42, 0.0  ;;  %v1851_v51 = vmul.f32 0.2, %v1835_v42 }
 0x22e   :  { %v1867_v49 = vsel %vm1843_vm1, 1.0, %v2418_v61 }
 0x22f   :  { %v1859_v1 = vsel %vm1843_vm1, %v1835_v42, %v1851_v51 }
 0x230   :  { %v1467_v16 = vpop.f32.mrf.mxu3  ;;  %1963 = vmatmul.f32.vlgmr.msrb.gmra.mxu0 %v1859_v1  ;;  %v1554_v27 = vpop.f32.mrf.mxu2  ;;  %v1943_v1 = vld [vmem:[#allocation13 + $0x1e0] sm:$0xff] }
 0x231   :  { %v1468_v43 = vadd.f32 %v1467_v16, %v1439_v56  ;;  %v1555_v38 = vadd.f32 %v1554_v27, %v1526_v41  ;;  %v1609_v16 = vpop.f32.mrf.mxu0  ;;  %2037 = vmatpush.msrb.mxu3 %v1943_v1 }
 0x232   :  { %v1639_v6 = vadd.f32 %v1638_v55, %v1609_v16 }
 0x233   :  { %v1839_v47 = vadd.f32 %v1827_v35, %v1468_v43 }
 0x235   :  { %vm1847_vm2 = vcmp.gt.f32.partialorder %v1839_v47, 0.0  ;;  %v1855_v4 = vmul.f32 0.2, %v1839_v47 }
 0x236   :  { %v1871_v17 = vsel %vm1847_vm2, 1.0, %v2418_v61 }
 0x237   :  { %v1863_v2 = vsel %vm1847_vm2, %v1839_v47, %v1855_v4  ;;  %v1942_v4 = vld [vmem:[#allocation13 + $0x1d8] sm:$0xff] }
 0x238   :  { %v1470_v26 = vpop.f32.mrf.mxu3  ;;  %1966 = vmatmul.f32.gmra.mxu0 %v1863_v2  ;;  %v1557_v14 = vpop.f32.mrf.mxu2  ;;  %2038 = vmatpush.msrb.mxu3 %v1942_v4  ;;  %v1532_v2 = vadd.f32 %v1531_v31, %v1502_v34  ;;  %v1830_v4 = vperm.slane %v2901_v58, 3 }
 0x239   :  { %v1471_v29 = vadd.f32 %v1470_v26, %v1442_v59  ;;  %v1558_v47 = vadd.f32 %v1557_v14, %v1529_v15  ;;  %v1939_v26 = vld [vmem:[#allocation13 + $0x1c0] sm:$0xff]  ;;  %v1612_v60 = vpop.f32.mrf.mxu0  ;;  %v1644_v14 = vpop.f32.mrf.mxu1 }
 0x23a   :  { %2039 = vmatpush.msrb.mxu3 %v1941_v5 }
 0x23b   :  { %v1875_v39 = vmul.f32 %v1867_v49, %v1471_v29  ;;  %v1938_v49 = vld [vmem:[#allocation13 + $0x1b8] sm:$0xff] }
 0x23c   :  { %2040 = vmatpush.msrb.mxu3 %v1940_v63 }
 0x23e   :  { %2041 = vmatpush.msrb.mxu3 %v1939_v26 }
 0x240   :  { %v1473_v50 = vpop.f32.mrf.mxu3  ;;  %1969 = vmatmul.f32.gmra.mxu0 %v1875_v39  ;;  %v1560_v23 = vpop.f32.mrf.mxu2  ;;  %2042 = vmatpush.msrb.mxu3 %v1938_v49  ;;  %v1936_v39 = vld [vmem:[#allocation13 + $0x1a8] sm:$0xff] }
 0x241   :  { %v1474_v12 = vadd.f32 %v1473_v50, %v1445_v48  ;;  %v1561_v27 = vadd.f32 %v1560_v23, %v1532_v2  ;;  %v1615_v37 = vpop.f32.mrf.mxu0  ;;  %v1647_v34 = vpop.f32.mrf.mxu1 }
 0x242   :  { %2043 = vmatpush.msrb.mxu3 %v1937_v9  ;;  %v1645_v30 = vadd.f32 %v1644_v14, %v1615_v37 }
 0x243   :  { %v1879_v18 = vmul.f32 %v1871_v17, %v1474_v12 }
 0x244   :  { %2044 = vmatpush.msrb.mxu3 %v1936_v39 }
 0x246   :  { %2045 = vmatpush.msrb.mxu3 %v1935_v10 }
 0x248   :  { %v1580_v22 = vpop.f32.mrf.mxu3  ;;  %1972 = vmatmul.f32.gmra.mxu0 %v1879_v18  ;;  %v1667_v43 = vpop.f32.mrf.mxu2  ;;  %2046 = vmatpush.msrb.mxu3 %v1934_v36 }
 0x249   :  { %v1581_v28 = vadd.f32 %v1580_v22, %v1552_v20  ;;  %v1668_v12 = vadd.f32 %v1667_v43, %v1639_v6  ;;  %v1642_v20 = vadd.f32 %v1641_v24, %v1612_v60  ;;  %v1932_v22 = vld [vmem:[#allocation13 + $0x188] sm:$0xff]  ;;  %v1618_v23 = vpop.f32.mrf.mxu0  ;;  %v1754_v54 = vpop.f32.mrf.mxu1 }
 0x24a   :  { %2047 = vmatpush.msrb.mxu3 %v1933_v19  ;;  %v1648_v52 = vadd.f32 %v1647_v34, %v1618_v23 }
 0x24b   :  { %v1836_v32 = vadd.f32 %v1828_v21, %v1581_v28  ;;  %v1931_v28 = vld [vmem:[#allocation13 + $0x180] sm:$0xff] }
 0x24c   :  { %2048 = vmatpush.msrb.mxu3 %v1932_v22 }
 0x24d   :  { %vm1844_vm3 = vcmp.gt.f32.partialorder %v1836_v32, 0.0  ;;  %v1852_v35 = vmul.f32 0.2, %v1836_v32 }
 0x24e   :  { %v1868_v57 = vsel %vm1844_vm3, 1.0, %v2418_v61  ;;  %2049 = vmatpush.msrb.mxu3 %v1931_v28 }
 0x24f   :  { %v1860_v42 = vsel %vm1844_vm3, %v1836_v32, %v1852_v35 }
 0x250   :  { %v1583_v45 = vpop.f32.mrf.mxu3  ;;  %1992 = vmatmul.f32.vlgmr.msrb.gmra.mxu1 %v1860_v42  ;;  %v1670_v7 = vpop.f32.mrf.mxu2 }
 0x251   :  { %v1584_v46 = vadd.f32 %v1583_v45, %v1555_v38  ;;  %v1671_v25 = vadd.f32 %v1670_v7, %v1642_v20  ;;  %v1725_v55 = vpop.f32.mrf.mxu0 }
 0x252   :  { %v1755_v43 = vadd.f32 %v1754_v54, %v1725_v55 }
 0x253   :  { %v1840_v51 = vadd.f32 %v1828_v21, %v1584_v46 }
 0x255   :  { %vm1848_vm4 = vcmp.gt.f32.partialorder %v1840_v51, 0.0  ;;  %v1856_v56 = vmul.f32 0.2, %v1840_v51 }
 0x256   :  { %v1872_v48 = vsel %vm1848_vm4, 1.0, %v2418_v61 }
 0x257   :  { %v1864_v44 = vsel %vm1848_vm4, %v1840_v51, %v1856_v56 }
 0x258   :  { %v1586_v40 = vpop.f32.mrf.mxu3  ;;  %1995 = vmatmul.f32.gmra.mxu1 %v1864_v44  ;;  %v1673_v17 = vpop.f32.mrf.mxu2 }
 0x259   :  { %v1587_v3 = vadd.f32 %v1586_v40, %v1558_v47  ;;  %v1674_v42 = vadd.f32 %v1673_v17, %v1645_v30  ;;  %v1757_v40 = vpop.f32.mrf.mxu1  ;;  %v1728_v63 = vpop.f32.mrf.mxu0 }
 0x25a   :  { %v1758_v26 = vadd.f32 %v1757_v40, %v1728_v63 }
 0x25b   :  { %v1876_v59 = vmul.f32 %v1868_v57, %v1587_v3 }
 0x260   :  { %v1589_v29 = vpop.f32.mrf.mxu3  ;;  %1998 = vmatmul.f32.gmra.mxu1 %v1876_v59  ;;  %v1676_v35 = vpop.f32.mrf.mxu2 }
 0x261   :  { %v1590_v62 = vadd.f32 %v1589_v29, %v1561_v27  ;;  %v1677_v15 = vadd.f32 %v1676_v35, %v1648_v52  ;;  %v1760_v7 = vpop.f32.mrf.mxu1  ;;  %v1731_v49 = vpop.f32.mrf.mxu0 }
 0x262   :  { %v1761_v6 = vadd.f32 %v1760_v7, %v1731_v49 }
 0x263   :  { %v1880_v50 = vmul.f32 %v1872_v48, %v1590_v62 }
 0x268   :  { %v1696_v13 = vpop.f32.mrf.mxu3  ;;  %2001 = vmatmul.f32.gmra.mxu1 %v1880_v50  ;;  %v1783_v56 = vpop.f32.mrf.mxu2 }
 0x269   :  { %v1697_v8 = vadd.f32 %v1696_v13, %v1668_v12  ;;  %v1784_v3 = vadd.f32 %v1783_v56, %v1755_v43  ;;  %v1734_v13 = vpop.f32.mrf.mxu0 }
 0x26b   :  { %v1837_v18 = vadd.f32 %v1829_v11, %v1697_v8 }
 0x26d   :  { %vm1845_vm5 = vcmp.gt.f32.partialorder %v1837_v18, 0.0  ;;  %v1853_v21 = vmul.f32 0.2, %v1837_v18 }
 0x26e   :  { %v1869_v51 = vsel %vm1845_vm5, 1.0, %v2418_v61 }
 0x26f   :  { %v1861_v31 = vsel %vm1845_vm5, %v1837_v18, %v1853_v21 }
 0x270   :  { %v1699_v32 = vpop.f32.mrf.mxu3  ;;  %2021 = vmatmul.f32.vlgmr.msrb.gmra.mxu2 %v1861_v31  ;;  %v1786_v57 = vpop.f32.mrf.mxu2 }
 0x271   :  { %v1700_v33 = vadd.f32 %v1699_v32, %v1671_v25  ;;  %v1787_v27 = vadd.f32 %v1786_v57, %v1758_v26 }
 0x273   :  { %v1841_v41 = vadd.f32 %v1829_v11, %v1700_v33  ;;  %v1763_v11 = vpop.f32.mrf.mxu1 }
 0x274   :  { %v1764_v36 = vadd.f32 %v1763_v11, %v1734_v13 }
 0x275   :  { %vm1849_vm6 = vcmp.gt.f32.partialorder %v1841_v41, 0.0  ;;  %v1857_v0 = vmul.f32 0.2, %v1841_v41 }
 0x276   :  { %v1873_v44 = vsel %vm1849_vm6, 1.0, %v2418_v61 }
 0x277   :  { %v1865_v38 = vsel %vm1849_vm6, %v1841_v41, %v1857_v0  ;;  %v2145_v41 = vld [vmem:[#allocation14] ss:$0 sm:$0xff] }
 0x278   :  { %v1702_v45 = vpop.f32.mrf.mxu3  ;;  %2024 = vmatmul.f32.gmra.mxu2 %v1865_v38  ;;  %v1789_v9 = vpop.f32.mrf.mxu2 }
 0x279   :  { %v1703_v46 = vadd.f32 %v1702_v45, %v1674_v42  ;;  %v1790_v50 = vadd.f32 %v1789_v9, %v1761_v6 }
 0x27b   :  { %v1877_v53 = vmul.f32 %v1869_v51, %v1703_v46 }
 0x280   :  { %v1705_v1 = vpop.f32.mrf.mxu3  ;;  %2027 = vmatmul.f32.gmra.mxu2 %v1877_v53  ;;  %v1792_v14 = vpop.f32.mrf.mxu2 }
 0x281   :  { %v1706_v16 = vadd.f32 %v1705_v1, %v1677_v15  ;;  %v1793_v17 = vadd.f32 %v1792_v14, %v1764_v36 }
 0x283   :  { %v1881_v47 = vmul.f32 %v1873_v44, %v1706_v16 }
 0x288   :  { %v1812_v5 = vpop.f32.mrf.mxu3  ;;  %2030 = vmatmul.f32.gmra.mxu2 %v1881_v47 }
 0x289   :  { %v1813_v2 = vadd.f32 %v1812_v5, %v1784_v3 }
 0x28b   :  { %v1838_v59 = vadd.f32 %v1830_v4, %v1813_v2 }
 0x28d   :  { %vm1846_vm7 = vcmp.gt.f32.partialorder %v1838_v59, 0.0  ;;  %v1854_v24 = vmul.f32 0.2, %v1838_v59 }
 0x28e   :  { %v1870_v8 = vsel %vm1846_vm7, 1.0, %v2418_v61 }
 0x28f   :  { %v1862_v29 = vsel %vm1846_vm7, %v1838_v59, %v1854_v24 }
 0x290   :  { %v1815_v60 = vpop.f32.mrf.mxu3  ;;  %2050 = vmatmul.f32.vlgmr.msrb.gmra.mxu3 %v1862_v29 }
 0x291   :  { %v1816_v62 = vadd.f32 %v1815_v60, %v1787_v27 }
 0x293   :  { %v1842_v39 = vadd.f32 %v1830_v4, %v1816_v62 }
 0x295   :  { %vm1850_vm8 = vcmp.gt.f32.partialorder %v1842_v39, 0.0  ;;  %v1858_v58 = vmul.f32 0.2, %v1842_v39 }
 0x296   :  { %v1874_v20 = vsel %vm1850_vm8, 1.0, %v2418_v61 }
 0x297   :  { %v1866_v48 = vsel %vm1850_vm8, %v1842_v39, %v1858_v58 }
 0x298   :  { %v1818_v10 = vpop.f32.mrf.mxu3  ;;  %2053 = vmatmul.f32.gmra.mxu3 %v1866_v48 }
 0x299   :  { %v1819_v12 = vadd.f32 %v1818_v10, %v1790_v50 }
 0x29b   :  { %v1878_v37 = vmul.f32 %v1870_v8, %v1819_v12 }
 0x2a0   :  { %v1821_v18 = vpop.f32.mrf.mxu3  ;;  %2056 = vmatmul.f32.gmra.mxu3 %v1878_v37 }
 0x2a1   :  { %v1822_v19 = vadd.f32 %v1821_v18, %v1793_v17 }
 0x2a3   :  { %v1882_v21 = vmul.f32 %v1874_v20, %v1822_v19 }
 0x2a8   :  { %2059 = vmatmul.f32.gmra.mxu3 %v1882_v21 }
 0x2ad   :  { %v1964_v28 = vpop.f32.mrf.mxu0 }
 0x2b5   :  { %v1967_v33 = vpop.f32.mrf.mxu0 }
 0x2bd   :  { %v1970_v54 = vpop.f32.mrf.mxu0 }
 0x2c5   :  { %v1973_v43 = vpop.f32.mrf.mxu0 }
 0x2cd   :  { %v1993_v22 = vpop.f32.mrf.mxu1 }
 0x2ce   :  { %v1994_v31 = vadd.f32 %v1993_v22, %v1964_v28 }
 0x2d5   :  { %v1996_v32 = vpop.f32.mrf.mxu1 }
 0x2d6   :  { %v1997_v38 = vadd.f32 %v1996_v32, %v1967_v33 }
 0x2dd   :  { %v1999_v45 = vpop.f32.mrf.mxu1 }
 0x2de   :  { %v2000_v53 = vadd.f32 %v1999_v45, %v1970_v54 }
 0x2e5   :  { %v2002_v1 = vpop.f32.mrf.mxu1 }
 0x2e6   :  { %v2003_v47 = vadd.f32 %v2002_v1, %v1973_v43 }
 0x2f3   :  { %v2022_v25 = vpop.f32.mrf.mxu2 }
 0x2f4   :  { %v2023_v34 = vadd.f32 %v2022_v25, %v1994_v31 }
 0x2fb   :  { %v2025_v23 = vpop.f32.mrf.mxu2 }
 0x2fc   :  { %v2026_v42 = vadd.f32 %v2025_v23, %v1997_v38 }
 0x303   :  { %v2028_v51 = vpop.f32.mrf.mxu2 }
 0x304   :  { %v2029_v55 = vadd.f32 %v2028_v51, %v2000_v53 }
 0x30b   :  { %v2031_v44 = vpop.f32.mrf.mxu2 }
 0x30c   :  { %v2032_v40 = vadd.f32 %v2031_v44, %v2003_v47 }
 0x313   :  { %v2051_v35 = vpop.f32.mrf.mxu3 }
 0x314   :  { %v2052_v0 = vadd.f32 %v2051_v35, %v2023_v34 }
 0x316   :  { %v2067_v30 = vadd.f32 %v2145_v41, %v2052_v0 }
 0x318   :  { %2069 = vst [vmem:[#allocation16] sm:$0xff] %v2067_v30 }
 0x31b   :  { %v2054_v46 = vpop.f32.mrf.mxu3 }
 0x31c   :  { %v2055_v61 = vadd.f32 %v2054_v46, %v2026_v42 }
 0x31e   :  { %v2068_v52 = vadd.f32 %v2145_v41, %v2055_v61 }
 0x320   :  { %2070 = vst [vmem:[#allocation16 + $0x8] sm:$0xff] %v2068_v52 }
 0x321   :  { %2091 = dma.vmem_to_hbm [thread:$0]  %s2084_s17, 256, %s2086_s28, [#allocation4], %s2412_s10, %s2412_s10, %s2413_s11  }
 0x323   :  { %v2057_v56 = vpop.f32.mrf.mxu3 }
 0x324   :  { %v2058_v15 = vadd.f32 %v2057_v56, %v2029_v55 }
 0x326   :  { %v2071_v16 = vand.u32 2147483647, %v2058_v15 }
 0x328   :  { %2146 = vlog2.f32 %v2071_v16 }
 0x32b   :  { %v2060_v3 = vpop.f32.mrf.mxu3 }
 0x32c   :  { %v2061_v4 = vadd.f32 %v2060_v3, %v2032_v40 }
 0x32e   :  { %v2147_v5 = vpop.eup %2146  ;;  %v2072_v63 = vand.u32 2147483647, %v2061_v4 }
 0x32f   :  { %v2074_v57 = vmul.f32 0.6931472, %v2147_v5 }
 0x330   :  { %2148 = vlog2.f32 %v2072_v63 }
 0x331   :  { %2077 = vst [vmem:[#allocation17] sm:$0xff] %v2074_v57 }
 0x336   :  { %v2149_v2 = vpop.eup %2148 }
 0x337   :  { %v2076_v59 = vmul.f32 0.6931472, %v2149_v2 }
 0x339   :  { %2078 = vst [vmem:[#allocation17 + $0x8] sm:$0xff] %v2076_v59 }
 0x33a   :  { %2104 = dma.vmem_to_hbm [thread:$0]  %s2097_s29, 256, %s2099_s12, [#allocation18], %s2412_s10, %s2412_s10, %s2413_s11  }
 0x33b   :  { %2400 = dma.done.wait [#allocation4], 256  }
 0x33c   :  { %2401 = vsyncadd [#allocation4], 4294967040 }
 0x33d   :  { %2402 = dma.done.wait [#allocation18], 256  }
 0x33e   :  { %2403 = vsyncadd [#allocation18], 4294967040 }
 0x33f   :  { %2113 = vsyncpa [#allocation3], 1 }
 0x340   :  { %2114 = vsyncpa [#allocation6], 1 }
 0x341   :  { %2115 = vsyncpa [#allocation9], 1 }
 0x342   :  { %2116 = vsyncpa [#allocation12], 1 }
 0x343   :  { %2117 = vsyncpa [#allocation15], 1 }
 0x344   :  { %2118 = vsyncpa [#allocation4], 1 }
 0x345   :  { %2119 = vsyncpa [#allocation18], 1 }

</bundles_post_ra>
